<compile_context>
chip_gen: v6e
topology: v6e:2x2x1
jax: 0.10.0
libtpu: 0.0.40
codegen_flags: <defaults>
</compile_context>

<pallas_src>
import re

import jax
import jax.numpy as jnp
from jax.experimental import pallas as pl
from jax.experimental.pallas import tpu as pltpu


def _round_up(x: int, m: int) -> int:
    return ((x + m - 1) // m) * m


def _cdiv(a: int, b: int) -> int:
    return (a + b - 1) // b


# Below this many elements, plain XLA beats kernel dispatch + pipeline warmup.
_PALLAS_MIN_ELEMS = 65536
# Per-input-tile VMEM budget (bytes): 2 inputs x 2 (or 3) buffers stays well
# under the 32 MiB scoped limit requested below, which itself leaves headroom
# on v7x (64 MiB physical VMEM).
_DEFAULT_MAX_TILE_BYTES = 4 * 1024 * 1024
_VMEM_LIMIT_BYTES = 32 * 1024 * 1024


def _make_sqerr_kernel(n, d, tn, td):
    """Build the per-tile sum-of-squared-differences kernel.

    n, d   : true (unpadded) array extents (compile-time Python ints).
    tn, td : tile extents; tn % 8 == 0, td % 128 == 0.
    """
    need_row_mask = (n % tn) != 0
    need_col_mask = (d % td) != 0

    def kernel(x_ref, y_ref, o_ref):
        # Native-dtype DMA; f32 upcast happens here, after the copy.
        dx = x_ref[...].astype(jnp.float32) - y_ref[...].astype(jnp.float32)

        # Boundary tiles contain unspecified data past the true extents; zero
        # it out before squaring.  Mask code is only emitted when needed.
        if need_row_mask or need_col_mask:
            mask = None
            if need_row_mask:
                rows = (jax.lax.broadcasted_iota(jnp.int32, (tn, td), 0)
                        + pl.program_id(0) * tn)
                mask = rows < n
            if need_col_mask:
                cols = (jax.lax.broadcasted_iota(jnp.int32, (tn, td), 1)
                        + pl.program_id(1) * td)
                cmask = cols < d
                mask = cmask if mask is None else jnp.logical_and(mask, cmask)
            dx = jnp.where(mask, dx, 0.0)

        sq = dx * dx
        # Lane-dense partial: fold sublane groups then lane groups.  Both are
        # elementwise vreg adds; the final store is one unmasked (8,128) vreg.
        folded = jnp.sum(sq.reshape(tn // 8, 8, td), axis=0)            # (8, td)
        o_ref[...] = jnp.sum(folded.reshape(8, td // 128, 128), axis=1)  # (8, 128)

    return kernel


def _pick_tiles(n, d, dtype_bytes, max_tile_bytes):
    """Choose (tn, td): lane/sublane aligned, padding-free when possible."""
    n_pad = _round_up(n, 8)
    d_pad = _round_up(d, 128)
    max_elems = max(max_tile_bytes // dtype_bytes, 8 * 128)

    if 8 * d_pad <= max_elems:
        # Full feature width: reduction axis collapses to a single grid step
        # and there are no wasted padded columns on the wire.
        td = d_pad
        tn = max((max_elems // td) // 8 * 8, 8)
        tn = min(tn, n_pad)
        if n_pad > 8:
            # Keep >= 2 row tiles so v7x can shard the grid across both TCs.
            tn = min(tn, _round_up(_cdiv(n_pad, 2), 8))
    else:
        # Very large D: tile the feature axis too.
        tn = min(64, n_pad)
        td = max(128, min((max_elems // tn) // 128 * 128, d_pad))
    return tn, td


def _input_block_spec(block_shape, extra_buffering):
    index_map = lambda i, j: (i, j)
    if extra_buffering and hasattr(pl, "Buffered"):
        try:
            # Deeper pipelining for small tiles (hides DMA issue latency at
            # v7x HBM bandwidth); cheap against the 32 MiB scoped budget.
            return pl.BlockSpec(block_shape, index_map,
                                pipeline_mode=pl.Buffered(3))
        except TypeError:
            # Older jax without pipeline_mode — fall back to default (2).
            pass
    return pl.BlockSpec(block_shape, index_map)


def img_reconstruction_loss(x_in, im_recon, lambda_=1.0,
                            max_tile_bytes=_DEFAULT_MAX_TILE_BYTES):
    """x_in, im_recon: (N, C, H, W) arrays (any float dtype). Returns scalar f32."""
    assert x_in.shape == im_recon.shape
    n = int(x_in.shape[0])
    d = int(x_in.size // n)

    # Flatten each sample to a row; keep the native dtype on the wire.
    x2 = jnp.reshape(x_in, (n, d))
    y2 = jnp.reshape(im_recon, (n, d))
    inv_nd = jnp.float32(lambda_) / jnp.float32(n * d)

    # Tiny inputs: plain XLA is faster than kernel dispatch + pipeline warmup.
    if n * d < _PALLAS_MIN_ELEMS:
        dx = x2.astype(jnp.float32) - y2.astype(jnp.float32)
        return inv_nd * jnp.sum(dx * dx)

    dtype_bytes = jnp.dtype(x2.dtype).itemsize
    tn, td = _pick_tiles(n, d, dtype_bytes, max_tile_bytes)
    grid = (_cdiv(n, tn), _cdiv(d, td))
    n_steps = grid[0] * grid[1]

    tile_bytes = tn * td * dtype_bytes
    extra_buffering = (tile_bytes < (1 << 20)) and n_steps > 2

    out_rows, out_cols = grid[0] * 8, grid[1] * 128
    cost = pl.CostEstimate(
        flops=3 * n * d,                                   # sub, mul, add
        transcendentals=0,
        bytes_accessed=2 * n * d * dtype_bytes + out_rows * out_cols * 4,
    )

    partials = pl.pallas_call(
        _make_sqerr_kernel(n, d, tn, td),
        out_shape=jax.ShapeDtypeStruct((out_rows, out_cols), jnp.float32),
        grid=grid,
        in_specs=[
            _input_block_spec((tn, td), extra_buffering),
            _input_block_spec((tn, td), extra_buffering),
        ],
        # Each grid step writes its own (8,128) partial block: no resident
        # accumulator, no serial chain, both axes freely shardable.
        out_specs=pl.BlockSpec((8, 128), lambda i, j: (i, j)),
        compiler_params=pltpu.CompilerParams(
            dimension_semantics=("parallel", "parallel"),
            vmem_limit_bytes=_VMEM_LIMIT_BYTES,
        ),
        cost_estimate=cost,
    )(x2, y2)

    # Sum the tiny partials array; divide by the TRUE element count.
    return inv_nd * jnp.sum(partials)


def _camel_to_snake(name: str) -> str:
    s1 = re.sub("(.)([A-Z][a-z]+)", r"\1_\2", name)
    return re.sub("([a-z0-9])([A-Z])", r"\1_\2", s1).lower()


class ImgReconstruction:
    """JAX analogue of the PyTorch ImgReconstruction elementary loss.

    elb = identity, logit = False.  start_epoch/end_epoch default to None
    -> loss is always on.
    """

    def __init__(self, lambda_=1.0, start_epoch=None, end_epoch=None, name=None):
        self._name = name
        self.lambda_ = lambda_
        if end_epoch == -1:
            end_epoch = None
        self.start_epoch = start_epoch
        self.end_epoch = end_epoch
        self.c_epoch = 0

    @property
    def __name__(self):
        if self._name is None:
            return _camel_to_snake(self.__class__.__name__)
        return self._name

    def is_on(self, _epoch=None):
        c_epoch = self.c_epoch if _epoch is None else _epoch
        if self.start_epoch is None and self.end_epoch is None:
            return True
        l = [c_epoch, self.start_epoch, self.end_epoch]
        if all(isinstance(z, int) for z in l):
            return self.start_epoch <= c_epoch <= self.end_epoch
        if self.start_epoch is None and isinstance(self.end_epoch, int):
            return c_epoch <= self.end_epoch
        if isinstance(self.start_epoch, int) and self.end_epoch is None:
            return c_epoch >= self.start_epoch
        return False

    def __call__(self, epoch=0, x_in=None, im_recon=None, **kwargs):
        self.c_epoch = epoch
        if not self.is_on():
            return jnp.float32(0.0)
        return img_reconstruction_loss(x_in, im_recon, lambda_=self.lambda_)


class MasterLoss:
    """Minimal JAX analogue of the PyTorch MasterLoss container.

    forward(**kwargs) calls every registered elementary loss and returns
    their sum; l_holder = [total, loss_0, loss_1, ...] as in the original.
    """

    def __init__(self, name=None):
        self._name = name
        self.losses = []
        self.l_holder = []
        self.n_holder = [self.__name__]

    @property
    def __name__(self):
        if self._name is None:
            return _camel_to_snake(self.__class__.__name__)
        return self._name

    def add(self, loss_):
        self.losses.append(loss_)
        self.n_holder.append(loss_.__name__)

    def update_t(self):
        # TODO(synk): ELB (log-barrier) scheduling not implemented; elb=Identity only.
        pass

    def check_losses_status(self):
        print("-" * 60)
        print("Losses status:")
        for i, loss in enumerate(self.losses):
            if hasattr(loss, "is_on"):
                print(self.n_holder[i + 1], ": ... ", loss.is_on(),
                      "({}, {})".format(loss.start_epoch, loss.end_epoch))
        print("-" * 60)

    def __call__(self, **kwargs):
        assert self.losses != []
        self.l_holder = []
        for loss in self.losses:
            self.l_holder.append(loss(**kwargs))
        total = sum(self.l_holder)
        self.l_holder = [total] + self.l_holder
        return total


if __name__ == "__main__":
    key = jax.random.PRNGKey(0)
    k1, k2, k3, k4, k5, k6, k7, k8 = jax.random.split(key, 8)

    def ref_loss(x, y):
        nn_ = x.shape[0]
        d32 = x.astype(jnp.float32) - y.astype(jnp.float32)
        return jnp.mean(jnp.mean(jnp.reshape(d32 * d32, (nn_, -1)), axis=1))

    master = MasterLoss()
    master.add(ImgReconstruction(lambda_=1.0))

    # 1) Tiny shape (original test): plain-jnp fallback path.
    x_s = jax.random.normal(k1, (2, 4, 16, 16), dtype=jnp.float32)
    y_s = jax.random.normal(k2, (2, 4, 16, 16), dtype=jnp.float32)
    out_s = jax.block_until_ready(master(epoch=0, x_in=x_s, im_recon=y_s))
    assert jnp.allclose(out_s, ref_loss(x_s, y_s), rtol=1e-5, atol=1e-6), out_s

    # 2) Multi-row-tile f32 case: Pallas kernel, full-width td, 2 row tiles
    #    ("parallel" x "parallel" grid), row-tail masking (24 % 16 != 0).
    x_a = jax.random.normal(k3, (24, 4, 32, 32), dtype=jnp.float32)
    y_a = jax.random.normal(k4, (24, 4, 32, 32), dtype=jnp.float32)
    out_a = jax.block_until_ready(master(epoch=0, x_in=x_a, im_recon=y_a))
    assert jnp.allclose(out_a, ref_loss(x_a, y_a), rtol=1e-5, atol=1e-6), out_a

    # 3) Ragged bf16 case: Pallas kernel, native-bf16 DMA, row+col tail masks.
    x_r = jax.random.normal(k5, (6, 3, 63, 63), dtype=jnp.float32).astype(jnp.bfloat16)
    y_r = jax.random.normal(k6, (6, 3, 63, 63), dtype=jnp.float32).astype(jnp.bfloat16)
    out_r = jax.block_until_ready(master(epoch=0, x_in=x_r, im_recon=y_r))
    assert jnp.allclose(out_r, ref_loss(x_r, y_r), rtol=1e-4, atol=1e-6), out_r

    # 4) Column-tiled path (small tile budget forces feature tiling + deeper
    #    buffering): exercises the multi-step grid and col-tail masking.
    x_c = jax.random.normal(k7, (16, 3, 48, 48), dtype=jnp.float32)
    y_c = jax.random.normal(k8, (16, 3, 48, 48), dtype=jnp.float32)
    out_c = jax.block_until_ready(
        img_reconstruction_loss(x_c, y_c, lambda_=1.0, max_tile_bytes=64 * 1024))
    assert jnp.allclose(out_c, ref_loss(x_c, y_c), rtol=1e-5, atol=1e-6), out_c

    print("KERNEL_OK")
</pallas_src>

<mosaic_0001>
module attributes {stable_mosaic.version = 11 : i64} {
  func.func @kernel(%arg0: i32, %arg1: i32, %arg2: memref<16x4096xf32, #tpu.memory_space<vmem>>, %arg3: memref<16x4096xf32, #tpu.memory_space<vmem>>, %arg4: memref<8x128xf32, #tpu.memory_space<vmem>>) attributes {dimension_semantics = [#tpu.dimension_semantics<parallel>, #tpu.dimension_semantics<parallel>], iteration_bounds = array<i64: 2, 1>, scalar_prefetch = 0 : i64, scratch_operands = 0 : i64, tpu.core_type = #tpu.core_type<tc>, window_params = [{transform_indices = @transform_0, window_bounds = array<i64: 16, 4096>}, {transform_indices = @transform_1, window_bounds = array<i64: 16, 4096>}, {transform_indices = @transform_2, window_bounds = array<i64: 8, 128>}]} {
    %c0 = arith.constant 0 : index
    %c0_0 = arith.constant 0 : index
    %0 = vector.load %arg2[%c0, %c0_0] : memref<16x4096xf32, #tpu.memory_space<vmem>>, vector<16x4096xf32>
    %c0_1 = arith.constant 0 : index
    %c0_2 = arith.constant 0 : index
    %1 = vector.load %arg3[%c0_1, %c0_2] : memref<16x4096xf32, #tpu.memory_space<vmem>>, vector<16x4096xf32>
    %2 = arith.subf %0, %1 : vector<16x4096xf32>
    %3 = tpu.iota {dimensions = array<i32: 0>} : vector<16x4096xi32>
    %c16_i32 = arith.constant 16 : i32
    %4 = arith.muli %arg0, %c16_i32 : i32
    %5 = vector.broadcast %4 : i32 to vector<16x4096xi32>
    %6 = arith.addi %3, %5 : vector<16x4096xi32>
    %c24_i32 = arith.constant 24 : i32
    %7 = vector.broadcast %c24_i32 : i32 to vector<16x4096xi32>
    %8 = arith.cmpi slt, %6, %7 : vector<16x4096xi32>
    %cst = arith.constant 0.000000e+00 : f32
    %9 = vector.broadcast %cst : f32 to vector<16x4096xf32>
    %10 = arith.select %8, %2, %9 : vector<16x4096xi1>, vector<16x4096xf32>
    %11 = arith.mulf %10, %10 : vector<16x4096xf32>
    %12 = vector.shape_cast %11 : vector<16x4096xf32> to vector<2x8x4096xf32>
    %cst_3 = arith.constant dense<0.000000e+00> : vector<8x4096xf32>
    %13 = vector.multi_reduction <add>, %12, %cst_3 [0] : vector<2x8x4096xf32> to vector<8x4096xf32>
    %14 = vector.shape_cast %13 : vector<8x4096xf32> to vector<8x32x128xf32>
    %cst_4 = arith.constant dense<0.000000e+00> : vector<8x128xf32>
    %15 = vector.multi_reduction <add>, %14, %cst_4 [1] : vector<8x32x128xf32> to vector<8x128xf32>
    %c0_5 = arith.constant 0 : index
    %c0_6 = arith.constant 0 : index
    %16 = vector.load %arg4[%c0_5, %c0_6] : memref<8x128xf32, #tpu.memory_space<vmem>>, vector<8x128xf32>
    tpu.vector_store %arg4[%c0_5, %c0_6], %15 {strides = array<i32>} : memref<8x128xf32, #tpu.memory_space<vmem>>, vector<8x128xf32>,
    return
  }
  func.func @transform_0(%arg0: i32, %arg1: i32) -> (i32, i32) {
    %c0_i32 = arith.constant 0 : i32
    return %arg0, %arg1 : i32, i32
  }
  func.func @transform_1(%arg0: i32, %arg1: i32) -> (i32, i32) {
    %c0_i32 = arith.constant 0 : i32
    return %arg0, %arg1 : i32, i32
  }
  func.func @transform_2(%arg0: i32, %arg1: i32) -> (i32, i32) {
    %c0_i32 = arith.constant 0 : i32
    return %arg0, %arg1 : i32, i32
  }
}

</mosaic_0001>

<bundles_post_ra>
// kernel: tpu_custom_call.1
= control target key start
LH: loop header
LB: loop body
LE: loop exit
PB: predicated region body
PF: predicated region fallthrough
CT: control target
= control target key end

     0   :  { %7 = vsyncpa [#allocation3], 0  ;;  %s3215_s0 = inlined_call_operand.hbm [shape: f32[24,4096], index: 0, kind: input, shape index: {}]   ;;  %s3216_s1 = inlined_call_operand.hbm [shape: f32[24,4096], index: 1, kind: input, shape index: {}]   ;;  %s3217_s2 = inlined_call_operand.hbm [shape: f32[16,128], index: 2, kind: output, shape index: {}]  }
   0x1   :  { %9 = vsyncpa [#allocation3 + $0x1], 0 }
   0x2   :  { %10 = vsyncpa [#allocation6], 0 }
   0x3   :  { %12 = vsyncpa [#allocation6 + $0x1], 0 }
   0x4   :  { %13 = vsyncpa [#allocation4], 0 }
   0x5   :  { %15 = vsyncpa [#allocation4 + $0x1], 0  ;;  %s1640_s9 = smov 0   ;;  %s1642_s10 = smov 0  }
   0x6   :  { %s1644_s11 = smov 0   ;;  %s1646_s12 = smov 0  }
   0x7   :  { %s1648_s13 = smov 0   ;;  %s1650_s14 = smov 0  }
   0x8 LB: > { %s1378_s15 = sadd.s32 4294967295, %s1614_s14   ;;  %s1379_s16 = sadd.s32 4294967294, %s1614_s14   ;;  %s1614_s14 = sphi %s1650_s14, %s21_s14   ;;  %s1610_s13 = sphi %s1648_s13, %s3435_s13   ;;  %s1606_s12 = sphi %s1646_s12, %s3434_s12   ;;  %s1602_s11 = sphi %s1644_s11, %s3433_s11   ;;  %s1598_s10 = sphi %s1642_s10, %s3432_s10   ;;  %s1594_s9 = sphi %s1640_s9, %s3431_s9  }
   0x9   : > { %s33_s17 = sadd.s32 1, %s1610_s13  ;;  %s42_s18 = sadd.s32 1, %s1602_s11 }
   0xa   : > { %p35_p0 = scmp.ge.s32.totalorder %s33_s17, 2  ;;  %p49_p1 = scmp.ne.s32.totalorder %s1602_s11, %s1598_s10 }
   0xb   : > { %p50_p2 = scmp.eq.s32.totalorder %s1614_s14, 0  ;;  %p55_p3 = scmp.ne.s32.totalorder %s1598_s10, %s1594_s9 }
   0xc   : > { %s3437_s17 = smov (%p35_p0, %s33_s17), 0  ;;  %p56_p5 = scmp.eq.s32.totalorder %s1378_s15, 0 }
   0xd   : > { %p1681_p4 = por %p50_p2, %p49_p1  ;;  %s37_s20 = ssub.s32 %s1610_s13, %s3437_s17 }
   0xe   : > { %p109_p6 = scmp.eq.s32.totalorder %s1378_s15, 1  ;;  %p40_p7 = scmp.eq.s32.totalorder %s37_s20, 0 }
   0xf   : > { %p1687_p8 = por %p56_p5, %p55_p3  ;;  %p115_p10 = scmp.eq.s32.totalorder %s1379_s16, 1 }
  0x10   : > { %p1691_p9 = por %p109_p6, %p49_p1  ;;  %p3218_p12 = scmp.ge.s32.totalorder %s1614_s14, 2 }
  0x11   : > { %s1696_s23 = scalar_select %p40_p7, %s1602_s11, %s42_s18  }
  0x12   : > { %p1698_p11 = por %p115_p10, %p55_p3  ;;  %131 = sbr.rel (%p3218_p12) target bundleno = 87 (0x57), region = 16 }
  0x14   : > { %s3258_s24 = scalar_select %p1698_p11, 1, 0 }
  0x17   : > { %134 = sbr.rel (!%p1681_p4) target bundleno = 55 (0x37), region = 20  ;;  %s135_s25 = sand.u32 (%p1681_p4), 1, %s1602_s11  }
  0x18   : > { %s1383_s26 = sshll.u32 (%p1681_p4), %s1610_s13, 1  ;;  %s1382_s27 = sshll.u32 (%p1681_p4), %s135_s25, 9 }
  0x19   : > { %s142_s28 = ssub.s32 (%p1681_p4), 3, %s1383_s26  ;;  %s1712_s3 = scalar_lea.sflag (%p1681_p4), [#allocation3], %s135_s25 }
  0x1a   : > { %p143_p13 = scmp.lt.s32.totalorder (%p1681_p4), %s142_s28, 2  ;;  %s139_s4 = scalar_lea.vmem (%p1681_p4), [#allocation2], %s1382_s27 }
  0x1c   : > { %s3439_s28 = smov (!%p143_p13, %s142_s28), 2 }
  0x1d   : > { %s1709_s29 = sshll.u32 %s3439_s28, 12 }
  0x1e   : > { %s148_s30 = ssub.s32 8192, %s1709_s29 }
  0x1f   : > { %149 = vsyncadd %s1712_s3, %s148_s30  ;;  %p1386_p0 = scmp.ne.s32.totalorder %s1709_s29, 0  ;;  %s1411_s5 = sshll.u32 %s1610_s13, 13 }
  0x20   : > { %s1720_s8 = scalar_lea.hbm %s3215_s0, %s1411_s5  ;;  %s156_s15 = sshll.u32 %s139_s4, 4  ;;  %s1722_s15 = int_to_ptr.vmem [resolvable:$true] %s156_s15 }
  0x21   : > { %s1478_s16 = scalar_lea.hbm %s1720_s8, %s1709_s29  ;;  %s1482_s25 = scalar_lea.hbm %s3215_s0, 12288 }
  0x22   : > { %p1479_p1 = scmp.ne.s32.totalorder %s1720_s8, %s1478_s16  ;;  %p1484_p5 = scmp.lt.s32.totalorder %s1482_s25, %s1478_s16 }
  0x24   : > { %p1480_p2 = pnand %p1479_p1, %p1386_p0 }
  0x26   : > { %p1481_p3 = pneg %p1480_p2 }
  0x28   : > { %p1486_p6 = pnand %p1484_p5, %p1481_p3 }
  0x2a   : > { %1489 = shalt.err (!%p1486_p6)
}
  0x2b   : > { %s1490_s26 = scalar_lea.vmem %s1722_s15, %s1709_s29  ;;  %s1616_s27 = smov [#allocation2]  }
  0x2c   : > { %p1491_p7 = scmp.ne.s32.totalorder %s1722_s15, %s1490_s26  ;;  %s1494_s28 = sshll.u32 %s1616_s27, 4  ;;  %s1495_s28 = int_to_ptr.vmem [resolvable:$false] %s1494_s28 }
  0x2d   : > { %s1496_s30 = scalar_lea.vmem %s1495_s28, 16384  ;;  %p1497_p1 = scmp.lt.s32.totalorder %s1722_s15, %s1495_s28 }
  0x2e   : > { %p1492_p10 = pnand %p1491_p7, %p1386_p0  ;;  %p1498_p2 = scmp.lt.s32.totalorder %s1496_s30, %s1490_s26 }
  0x30   : > { %p1493_p13 = pneg %p1492_p10  ;;  %p1499_p12 = por %p1498_p2, %p1497_p1 }
  0x32   : > { %p1500_p11 = pnand %p1499_p12, %p1493_p13 }
  0x34   : > { %1503 = shalt.err (!%p1500_p11)
}
  0x35   : > { %s1617_s4 = smov 4096   ;;  %s1618_s5 = smov 256  }
  0x36   : > { %162 = dma.hbm_to_vmem [thread:$0]  (%p1386_p0), %s1720_s8, %s1709_s29, %s1722_s15, %s1712_s3, %s1617_s4, %s1617_s4, %s1618_s5  }
  0x37 PF: > { %165 = sbr.rel (!%p1681_p4) target bundleno = 87 (0x57), region = 24  ;;  %s166_s6 = sand.u32 (%p1681_p4), 1, %s1602_s11  }
  0x38   : > { %s1392_s7 = sshll.u32 (%p1681_p4), %s1610_s13, 1  ;;  %s1391_s16 = sshll.u32 (%p1681_p4), %s166_s6, 9 }
  0x39   : > { %s173_s18 = ssub.s32 (%p1681_p4), 3, %s1392_s7  ;;  %s1751_s26 = scalar_lea.sflag (%p1681_p4), [#allocation6], %s166_s6 }
  0x3a   : > { %p174_p11 = scmp.lt.s32.totalorder (%p1681_p4), %s173_s18, 2  ;;  %s170_s29 = scalar_lea.vmem (%p1681_p4), [#allocation5], %s1391_s16 }
  0x3c   : > { %s3441_s18 = smov (!%p174_p11, %s173_s18), 2 }
  0x3d   : > { %s1748_s20 = sshll.u32 %s3441_s18, 12 }
  0x3e   : > { %s179_s25 = ssub.s32 8192, %s1748_s20 }
  0x3f   : > { %180 = vsyncadd %s1751_s26, %s179_s25  ;;  %p1395_p4 = scmp.ne.s32.totalorder %s1748_s20, 0  ;;  %s1414_s19 = sshll.u32 %s1610_s13, 13 }
  0x40   : > { %s1759_s15 = scalar_lea.hbm %s3216_s1, %s1414_s19  ;;  %s187_s27 = sshll.u32 %s170_s29, 4  ;;  %s1761_s27 = int_to_ptr.vmem [resolvable:$true] %s187_s27 }
  0x41   : > { %s1504_s28 = scalar_lea.hbm %s1759_s15, %s1748_s20  ;;  %s1508_s5 = scalar_lea.hbm %s3216_s1, 12288 }
  0x42   : > { %p1505_p12 = scmp.ne.s32.totalorder %s1759_s15, %s1504_s28  ;;  %p1510_p5 = scmp.lt.s32.totalorder %s1508_s5, %s1504_s28 }
  0x44   : > { %p1506_p0 = pnand %p1505_p12, %p1395_p4 }
  0x46   : > { %p1507_p3 = pneg %p1506_p0 }
  0x48   : > { %p1512_p6 = pnand %p1510_p5, %p1507_p3 }
  0x4a   : > { %1515 = shalt.err (!%p1512_p6)
}
  0x4b   : > { %s1516_s6 = scalar_lea.vmem %s1761_s27, %s1748_s20  ;;  %s1619_s7 = smov [#allocation5]  }
  0x4c   : > { %p1517_p7 = scmp.ne.s32.totalorder %s1761_s27, %s1516_s6  ;;  %s1520_s16 = sshll.u32 %s1619_s7, 4  ;;  %s1521_s16 = int_to_ptr.vmem [resolvable:$false] %s1520_s16 }
  0x4d   : > { %s1522_s18 = scalar_lea.vmem %s1521_s16, 16384  ;;  %p1523_p1 = scmp.lt.s32.totalorder %s1761_s27, %s1521_s16 }
  0x4e   : > { %p1518_p10 = pnand %p1517_p7, %p1395_p4  ;;  %p1524_p2 = scmp.lt.s32.totalorder %s1522_s18, %s1516_s6 }
  0x50   : > { %p1519_p13 = pneg %p1518_p10  ;;  %p1525_p11 = por %p1524_p2, %p1523_p1 }
  0x52   : > { %p1526_p12 = pnand %p1525_p11, %p1519_p13 }
  0x54   : > { %1529 = shalt.err (!%p1526_p12)
}
  0x55   : > { %s1620_s25 = smov 4096   ;;  %s1621_s29 = smov 256  }
  0x56   : > { %193 = dma.hbm_to_vmem [thread:$0]  (%p1395_p4), %s1759_s15, %s1748_s20, %s1761_s27, %s1751_s26, %s1620_s25, %s1620_s25, %s1621_s29  }
  0x57 PF: > { %p1400_p0 = scmp.ge.s32.totalorder %s1614_s14, 1  ;;  %p195_p3 = scmp.lt.s32.totalorder %s1614_s14, 3 }
  0x59   : > { %p196_p5 = pnand %p1400_p0, %p195_p3 }
  0x5b   : > { %199 = sbr.rel (%p196_p5) target bundleno = 275 (0x113), region = 28 }
  0x60   : > { %s1786_s19 = sand.u32 1, %s1598_s10  }
  0x61   : > { %s1401_s3 = sshll.u32 %s1786_s19, 9  ;;  %s202_s8 = scalar_lea.sflag [#allocation3], %s1786_s19 }
  0x62   : > { %s1790_s28 = scalar_lea.vmem [#allocation2], %s1401_s3 }
  0x63   : > { %1581 = dma.done.wait (%p1687_p8), %s202_s8, 8192  }
  0x64   : > { %1583 = vsyncadd (%p1687_p8), %s202_s8, 4294959104  ;;  %s211_s20 = scalar_lea.sflag [#allocation6], %s1786_s19  ;;  %s1797_s26 = scalar_lea.vmem [#allocation5], %s1401_s3 }
  0x65   : > { %1585 = dma.done.wait (%p1687_p8), %s211_s20, 8192  }
  0x66   : > { %1587 = vsyncadd (%p1687_p8), %s211_s20, 4294959104  ;;  %v446_v0 = vlaneseq  ;;  %s1404_s15 = sshll.u32 %s1606_s12, 4  ;;  %v1622_v3 = vmov 1983009808   ;;  %v1623_v5 = vmov 1934713408  }
  0x67   : > { %v450_v2 = vstv %s1404_s15  ;;  %v618_v4 = vunpack.c.l.s4 %v1622_v3  ;;  %v682_v6 = vunpack.c.l.s4 %v1623_v5  ;;  %v254_v7 = vld [vmem:[%s1790_s28] sm:$0xff]  ;;  %v255_v8 = vld [vmem:[%s1790_s28 + $0x8] sm:$0xff]  ;;  %v1809_v10 = vld [vmem:[%s1790_s28 + $0x10] sm:$0xff]  ;;  %vm1239_vm2 = vcmask 1041409   ;;  %s1403_s21 = sshll.u32 %s1786_s19, 3  ;;  %s1406_s27 = sshll.u32 %s1606_s12, 7 }
  0x68   : > { %v447_v1 = vshrl.u32 %v446_v0, 7  ;;  %v1812_v11 = vld [vmem:[%s1790_s28 + $0x18] sm:$0xff]  ;;  %v1815_v12 = vld [vmem:[%s1790_s28 + $0x20] sm:$0xff]  ;;  %v1818_v15 = vld [vmem:[%s1790_s28 + $0x28] sm:$0xff]  ;;  %vm1241_vm3 = vcmask 1042434   ;;  %vm1243_vm4 = vcmask 1043459   ;;  %s3173_s7 = scalar_lea.hbm %s3217_s2, %s1406_s27 }
  0x69   : > { %v619_v14 = vunpack.c.0.s8 %v618_v4  ;;  %v1821_v16 = vld [vmem:[%s1790_s28 + $0x30] sm:$0xff]  ;;  %v1824_v17 = vld [vmem:[%s1790_s28 + $0x38] sm:$0xff]  ;;  %v683_v18 = vunpack.c.0.s8 %v682_v6  ;;  %v1827_v19 = vld [vmem:[%s1790_s28 + $0x40] sm:$0xff]  ;;  %vm1245_vm5 = vcmask 1044484   ;;  %vm1247_vm6 = vcmask 1045509   ;;  %s239_s30 = scalar_lea.vmem [#allocation7], %s1403_s21 }
  0x6a   : > { %v1806_v9 = vadd.s32 %v450_v2, %v447_v1  ;;  %v448_v13 = vadd.s32 8, %v447_v1  ;;  %v1830_v20 = vld [vmem:[%s1790_s28 + $0x48] sm:$0xff]  ;;  %v1833_v21 = vld [vmem:[%s1790_s28 + $0x50] sm:$0xff]  ;;  %v1836_v22 = vld [vmem:[%s1790_s28 + $0x58] sm:$0xff]  ;;  %vm1249_vm7 = vcmask 1046534   ;;  %s1270_s4 = sshll.u32 %s239_s30, 4  ;;  %s1271_s4 = int_to_ptr.vmem [resolvable:$true] %s1270_s4 }
  0x6b   : > { %v1839_v23 = vld [vmem:[%s1790_s28 + $0x60] sm:$0xff]  ;;  %v1842_v24 = vld [vmem:[%s1790_s28 + $0x68] sm:$0xff]  ;;  %v1848_v27 = vld [vmem:[%s1790_s28 + $0x70] sm:$0xff]  ;;  %v1863_v36 = vsub.s32 %v619_v14, %v447_v1  ;;  %v1887_v46 = vsub.s32 %v683_v18, %v447_v1  ;;  %vm1251_vm8 = vcmask 1047559   ;;  %s1256_s16 = scalar_lea.sflag [#allocation4], %s1786_s19  ;;  %s1530_s18 = scalar_lea.vmem %s1271_s4, 128 }
  0x6c   : > { %v318_v25 = vld [vmem:[%s1797_s26] sm:$0xff]  ;;  %v319_v26 = vld [vmem:[%s1797_s26 + $0x8] sm:$0xff]  ;;  %vm453_vm0 = vcmp.lt.s32.totalorder %v1806_v9, 24  ;;  %v1851_v28 = vld [vmem:[%s1790_s28 + $0x78] sm:$0xff]  ;;  %v1861_v35 = vadd.s32 %v450_v2, %v448_v13  ;;  %p1531_p8 = scmp.ne.s32.totalorder %s1271_s4, %s1530_s18  ;;  %s1624_s12 = smov [#allocation7]  }
  0x6d   : > { %v1854_v29 = vld [vmem:[%s1790_s28 + $0x80] sm:$0xff]  ;;  %v320_v30 = vld [vmem:[%s1797_s26 + $0x10] sm:$0xff]  ;;  %v321_v31 = vld [vmem:[%s1797_s26 + $0x18] sm:$0xff]  ;;  %v382_v33 = vsub.f32 %v254_v7, %v318_v25  ;;  %v383_v34 = vsub.f32 %v255_v8, %v319_v26  ;;  %3259 = vst [vmem:[#allocation11_spill] sm:$0xff] %v1863_v36  ;;  %s1534_s25 = sshll.u32 %s1624_s12, 4  ;;  %s1535_s25 = int_to_ptr.vmem [resolvable:$false] %s1534_s25 }
  0x6e   : > { %v1859_v32 = vld [vmem:[%s1797_s26 + $0x20] sm:$0xff]  ;;  %v1866_v37 = vld [vmem:[%s1790_s28 + $0x88] sm:$0xff]  ;;  %v1869_v38 = vld [vmem:[%s1790_s28 + $0x90] sm:$0xff]  ;;  %v384_v43 = vsub.f32 %v1809_v10, %v320_v30  ;;  %v385_v44 = vsub.f32 %v1812_v11, %v321_v31  ;;  %3260 = vst [vmem:[#allocation12_spill] sm:$0xff] %v1887_v46  ;;  %vm454_vm1 = vcmp.lt.s32.totalorder %v1861_v35, 24  ;;  %p1532_p4 = pnand %p1531_p8, %p1691_p9  ;;  %s1536_s29 = scalar_lea.vmem %s1535_s25, 256 }
  0x6f   : > { %v1872_v39 = vld [vmem:[%s1790_s28 + $0x98] sm:$0xff]  ;;  %v1875_v40 = vld [vmem:[%s1797_s26 + $0x28] sm:$0xff]  ;;  %v1878_v41 = vld [vmem:[%s1797_s26 + $0x30] sm:$0xff]  ;;  %v386_v45 = vsub.f32 %v1815_v12, %v1859_v32  ;;  %v1915_v56 = vsel %vm453_vm0, %v382_v33, 0.0  ;;  %v1943_v2 = vsel %vm453_vm0, %v383_v34, 0.0  ;;  %p1537_p7 = scmp.lt.s32.totalorder %s1271_s4, %s1535_s25  ;;  %p1538_p10 = scmp.lt.s32.totalorder %s1536_s29, %s1530_s18 }
  0x70   : > { %v1881_v42 = vld [vmem:[%s1797_s26 + $0x38] sm:$0xff]  ;;  %v1890_v47 = vld [vmem:[%s1790_s28 + $0xa0] sm:$0xff]  ;;  %v1893_v48 = vld [vmem:[%s1790_s28 + $0xa8] sm:$0xff]  ;;  %v387_v53 = vsub.f32 %v1818_v15, %v1875_v40  ;;  %v388_v54 = vsub.f32 %v1821_v16, %v1878_v41  ;;  %3262 = vst [vmem:[#allocation14_spill] sm:$0xff] %v1915_v56  ;;  %v1971_v13 = vsel %vm453_vm0, %v384_v43, 0.0  ;;  %v1999_v33 = vsel %vm453_vm0, %v385_v44, 0.0  ;;  %p1533_p6 = pneg %p1532_p4 }
  0x71   : > { %v1896_v49 = vld [vmem:[%s1790_s28 + $0xb0] sm:$0xff]  ;;  %v1899_v50 = vld [vmem:[%s1797_s26 + $0x40] sm:$0xff]  ;;  %v1902_v51 = vld [vmem:[%s1797_s26 + $0x48] sm:$0xff]  ;;  %3264 = vst [vmem:[#allocation16_spill] sm:$0xff] %v1943_v2  ;;  %v2027_v11 = vsel %vm453_vm0, %v386_v45, 0.0  ;;  %p1539_p13 = por %p1538_p10, %p1537_p7 }
  0x72   : > { %3261 = vst [vmem:[#allocation13_spill] sm:$0xff] %v1896_v49  ;;  %v1905_v52 = vld [vmem:[%s1797_s26 + $0x50] sm:$0xff]  ;;  %v1918_v57 = vld [vmem:[%s1790_s28 + $0xb8] sm:$0xff]  ;;  %v1921_v58 = vld [vmem:[%s1790_s28 + $0xc0] sm:$0xff]  ;;  %v2055_v46 = vsel %vm453_vm0, %v387_v53, 0.0  ;;  %v2083_v2 = vsel %vm453_vm0, %v388_v54, 0.0 }
  0x73   : > { %v1924_v59 = vld [vmem:[%s1790_s28 + $0xc8] sm:$0xff]  ;;  %v1927_v60 = vld [vmem:[%s1797_s26 + $0x58] sm:$0xff]  ;;  %v1930_v61 = vld [vmem:[%s1797_s26 + $0x60] sm:$0xff]  ;;  %3266 = vst [vmem:[#allocation18_spill] sm:$0xff] %v1971_v13  ;;  %p1540_p1 = pnand %p1539_p13, %p1533_p6 }
  0x74   : > { %3263 = vst [vmem:[#allocation15_spill] sm:$0xff] %v1924_v59  ;;  %v1933_v62 = vld [vmem:[%s1797_s26 + $0x68] sm:$0xff]  ;;  %v1946_v3 = vld [vmem:[%s1790_s28 + $0xd0] sm:$0xff]  ;;  %v1949_v4 = vld [vmem:[%s1790_s28 + $0xd8] sm:$0xff] }
  0x75   : > { %v1952_v5 = vld [vmem:[%s1790_s28 + $0xe0] sm:$0xff]  ;;  %v1955_v6 = vld [vmem:[%s1797_s26 + $0x70] sm:$0xff]  ;;  %v1958_v7 = vld [vmem:[%s1797_s26 + $0x78] sm:$0xff]  ;;  %3268 = vst [vmem:[#allocation20_spill] sm:$0xff] %v1999_v33 }
  0x76   : > { %3265 = vst [vmem:[#allocation17_spill] sm:$0xff] %v1952_v5  ;;  %v1961_v8 = vld [vmem:[%s1797_s26 + $0x80] sm:$0xff]  ;;  %v1974_v14 = vld [vmem:[%s1790_s28 + $0xe8] sm:$0xff]  ;;  %v1977_v15 = vld [vmem:[%s1790_s28 + $0xf0] sm:$0xff] }
  0x77   : > { %v1980_v16 = vld [vmem:[%s1790_s28 + $0xf8] sm:$0xff]  ;;  %v1983_v18 = vld [vmem:[%s1797_s26 + $0x88] sm:$0xff]  ;;  %v1986_v25 = vld [vmem:[%s1797_s26 + $0x90] sm:$0xff]  ;;  %3271 = vst [vmem:[#allocation23_spill] sm:$0xff] %v2027_v11 }
  0x78   : > { %3267 = vst [vmem:[#allocation19_spill] sm:$0xff] %v1980_v16  ;;  %v1989_v26 = vld [vmem:[%s1797_s26 + $0x98] sm:$0xff]  ;;  %v2002_v34 = vld [vmem:[%s1790_s28 + $0x100] sm:$0xff]  ;;  %v2005_v40 = vld [vmem:[%s1790_s28 + $0x108] sm:$0xff] }
  0x79   : > { %v2008_v41 = vld [vmem:[%s1790_s28 + $0x110] sm:$0xff]  ;;  %v2011_v43 = vld [vmem:[%s1797_s26 + $0xa0] sm:$0xff]  ;;  %v2014_v30 = vld [vmem:[%s1797_s26 + $0xa8] sm:$0xff]  ;;  %3275 = vst [vmem:[#allocation27_spill] sm:$0xff] %v2055_v46 }
  0x7a   : > { %3269 = vst [vmem:[#allocation21_spill] sm:$0xff] %v2008_v41  ;;  %v2017_v31 = vld [vmem:[%s1797_s26 + $0xb0] sm:$0xff]  ;;  %v2030_v10 = vld [vmem:[%s1790_s28 + $0x118] sm:$0xff]  ;;  %v2033_v1 = vld [vmem:[%s1790_s28 + $0x120] sm:$0xff] }
  0x7b   : > { %3270 = vst [vmem:[#allocation22_spill] sm:$0xff] %v2017_v31  ;;  %v2036_v0 = vld [vmem:[%s1790_s28 + $0x128] sm:$0xff]  ;;  %v2039_v32 = vld [vmem:[%s1797_s26 + $0xb8] sm:$0xff]  ;;  %v2042_v63 = vld [vmem:[%s1797_s26 + $0xc0] sm:$0xff] }
  0x7c   : > { %3272 = vst [vmem:[#allocation24_spill] sm:$0xff] %v2039_v32  ;;  %3273 = vst [vmem:[#allocation25_spill] sm:$0xff] %v2042_v63  ;;  %v2045_v44 = vld [vmem:[%s1797_s26 + $0xc8] sm:$0xff]  ;;  %v2058_v36 = vld [vmem:[%s1790_s28 + $0x130] sm:$0xff] }
  0x7d   : > { %3274 = vst [vmem:[#allocation26_spill] sm:$0xff] %v2045_v44  ;;  %3276 = vst [vmem:[#allocation28_spill] sm:$0xff] %v2058_v36  ;;  %v2061_v11 = vld [vmem:[%s1790_s28 + $0x138] sm:$0xff]  ;;  %v2064_v33 = vld [vmem:[%s1790_s28 + $0x140] sm:$0xff]  ;;  %v3287_v44 = vsub.f32 %v1824_v17, %v1881_v42 }
  0x7e   : > { %3277 = vst [vmem:[#allocation29_spill] sm:$0xff] %v2061_v11  ;;  %3278 = vst [vmem:[#allocation30_spill] sm:$0xff] %v2064_v33  ;;  %v2067_v12 = vld [vmem:[%s1797_s26 + $0xd0] sm:$0xff]  ;;  %v2070_v13 = vld [vmem:[%s1797_s26 + $0xd8] sm:$0xff] }
  0x7f   : > { %3279 = vst [vmem:[#allocation31_spill] sm:$0xff] %v2067_v12  ;;  %3280 = vst [vmem:[#allocation32_spill] sm:$0xff] %v2070_v13  ;;  %v2073_v45 = vld [vmem:[%s1797_s26 + $0xe0] sm:$0xff]  ;;  %v2086_v56 = vld [vmem:[%s1790_s28 + $0x148] sm:$0xff]  ;;  %v2114_v59 = vsel %vm453_vm0, %v3287_v44, 0.0 }
  0x80   : > { %3281 = vst [vmem:[#allocation33_spill] sm:$0xff] %v2073_v45  ;;  %3282 = vst [vmem:[#allocation34_spill] sm:$0xff] %v2083_v2  ;;  %v2089_v31 = vld [vmem:[%s1790_s28 + $0x150] sm:$0xff]  ;;  %v2092_v49 = vld [vmem:[%s1790_s28 + $0x158] sm:$0xff] }
  0x81   : > { %3283 = vst [vmem:[#allocation35_spill] sm:$0xff] %v2092_v49  ;;  %v2095_v55 = vld [vmem:[%s1797_s26 + $0xe8] sm:$0xff]  ;;  %v2098_v32 = vld [vmem:[%s1797_s26 + $0xf0] sm:$0xff]  ;;  %v2101_v53 = vld [vmem:[%s1797_s26 + $0xf8] sm:$0xff] }
  0x82   : > { %3284 = vst [vmem:[#allocation36_spill] sm:$0xff] %v2095_v55  ;;  %3285 = vst [vmem:[#allocation37_spill] sm:$0xff] %v2098_v32  ;;  %v2117_v63 = vld [vmem:[%s1790_s28 + $0x160] sm:$0xff]  ;;  %v2120_v46 = vld [vmem:[%s1790_s28 + $0x168] sm:$0xff] }
  0x83   : > { %3286 = vst [vmem:[#allocation38_spill] sm:$0xff] %v2101_v53  ;;  %3288 = vst [vmem:[#allocation39_spill] sm:$0xff] %v2114_v59  ;;  %v2123_v12 = vld [vmem:[%s1790_s28 + $0x170] sm:$0xff]  ;;  %v2126_v54 = vld [vmem:[%s1797_s26 + $0x100] sm:$0xff]  ;;  %v3293_v59 = vsub.f32 %v1827_v19, %v1899_v50 }
  0x84   : > { %3289 = vst [vmem:[#allocation40_spill] sm:$0xff] %v2123_v12  ;;  %3290 = vst [vmem:[#allocation41_spill] sm:$0xff] %v2126_v54  ;;  %v2129_v13 = vld [vmem:[%s1797_s26 + $0x108] sm:$0xff]  ;;  %v2132_v2 = vld [vmem:[%s1797_s26 + $0x110] sm:$0xff] }
  0x85   : > { %3291 = vst [vmem:[#allocation42_spill] sm:$0xff] %v2129_v13  ;;  %3292 = vst [vmem:[#allocation43_spill] sm:$0xff] %v2132_v2  ;;  %v2145_v45 = vsel %vm453_vm0, %v3293_v59, 0.0  ;;  %v2148_v5 = vld [vmem:[%s1790_s28 + $0x178] sm:$0xff]  ;;  %v2151_v17 = vld [vmem:[%s1790_s28 + $0x180] sm:$0xff] }
  0x86   : > { %3294 = vst [vmem:[#allocation44_spill] sm:$0xff] %v2145_v45  ;;  %v2154_v55 = vld [vmem:[%s1790_s28 + $0x188] sm:$0xff]  ;;  %v2157_v42 = vld [vmem:[%s1797_s26 + $0x118] sm:$0xff]  ;;  %v2160_v32 = vld [vmem:[%s1797_s26 + $0x120] sm:$0xff]  ;;  %v3298_v45 = vsub.f32 %v1830_v20, %v1902_v51 }
  0x87   : > { %3295 = vst [vmem:[#allocation45_spill] sm:$0xff] %v2157_v42  ;;  %3296 = vst [vmem:[#allocation46_spill] sm:$0xff] %v2160_v32  ;;  %v2163_v44 = vld [vmem:[%s1797_s26 + $0x128] sm:$0xff]  ;;  %v2179_v16 = vld [vmem:[%s1790_s28 + $0x190] sm:$0xff] }
  0x88   : > { %3297 = vst [vmem:[#allocation47_spill] sm:$0xff] %v2163_v44  ;;  %v2176_v53 = vsel %vm453_vm0, %v3298_v45, 0.0  ;;  %v2182_v19 = vld [vmem:[%s1790_s28 + $0x198] sm:$0xff]  ;;  %v2185_v54 = vld [vmem:[%s1790_s28 + $0x1a0] sm:$0xff]  ;;  %v2188_v50 = vld [vmem:[%s1797_s26 + $0x130] sm:$0xff] }
  0x89   : > { %3299 = vst [vmem:[#allocation48_spill] sm:$0xff] %v2176_v53  ;;  %3300 = vst [vmem:[#allocation49_spill] sm:$0xff] %v2188_v50  ;;  %v2191_v13 = vld [vmem:[%s1797_s26 + $0x138] sm:$0xff]  ;;  %v2194_v59 = vld [vmem:[%s1797_s26 + $0x140] sm:$0xff]  ;;  %v3303_v53 = vsub.f32 %v1833_v21, %v1905_v52 }
  0x8a   : > { %3301 = vst [vmem:[#allocation50_spill] sm:$0xff] %v2191_v13  ;;  %3302 = vst [vmem:[#allocation51_spill] sm:$0xff] %v2194_v59  ;;  %v2210_v41 = vld [vmem:[%s1790_s28 + $0x1a8] sm:$0xff]  ;;  %v2213_v20 = vld [vmem:[%s1790_s28 + $0x1b0] sm:$0xff] }
  0x8b   : > { %v2207_v2 = vsel %vm453_vm0, %v3303_v53, 0.0  ;;  %v2216_v42 = vld [vmem:[%s1790_s28 + $0x1b8] sm:$0xff]  ;;  %v2219_v51 = vld [vmem:[%s1797_s26 + $0x148] sm:$0xff]  ;;  %v2222_v32 = vld [vmem:[%s1797_s26 + $0x150] sm:$0xff] }
  0x8c   : > { %3304 = vst [vmem:[#allocation52_spill] sm:$0xff] %v2207_v2  ;;  %3305 = vst [vmem:[#allocation53_spill] sm:$0xff] %v2219_v51  ;;  %v2225_v45 = vld [vmem:[%s1797_s26 + $0x158] sm:$0xff]  ;;  %v3308_v2 = vsub.f32 %v1836_v22, %v1927_v60  ;;  %v2242_v21 = vld [vmem:[%s1790_s28 + $0x1c0] sm:$0xff] }
  0x8d   : > { %3306 = vst [vmem:[#allocation54_spill] sm:$0xff] %v2222_v32  ;;  %3307 = vst [vmem:[#allocation55_spill] sm:$0xff] %v2225_v45  ;;  %v2245_v50 = vld [vmem:[%s1790_s28 + $0x1c8] sm:$0xff]  ;;  %v2248_v52 = vld [vmem:[%s1790_s28 + $0x1d0] sm:$0xff] }
  0x8e   : > { %v2239_v44 = vsel %vm453_vm0, %v3308_v2, 0.0  ;;  %v2251_v13 = vld [vmem:[%s1797_s26 + $0x160] sm:$0xff]  ;;  %v2254_v53 = vld [vmem:[%s1797_s26 + $0x168] sm:$0xff]  ;;  %v2257_v59 = vld [vmem:[%s1797_s26 + $0x170] sm:$0xff] }
  0x8f   : > { %3309 = vst [vmem:[#allocation56_spill] sm:$0xff] %v2239_v44  ;;  %3310 = vst [vmem:[#allocation57_spill] sm:$0xff] %v2254_v53  ;;  %v3312_v44 = vsub.f32 %v1839_v23, %v1930_v61  ;;  %v2273_v11 = vld [vmem:[%s1790_s28 + $0x1d8] sm:$0xff]  ;;  %v2276_v36 = vld [vmem:[%s1790_s28 + $0x1e0] sm:$0xff] }
  0x90   : > { %3311 = vst [vmem:[#allocation58_spill] sm:$0xff] %v2257_v59  ;;  %v2279_v22 = vld [vmem:[%s1790_s28 + $0x1e8] sm:$0xff]  ;;  %v2282_v51 = vld [vmem:[%s1797_s26 + $0x178] sm:$0xff]  ;;  %v2285_v60 = vld [vmem:[%s1797_s26 + $0x180] sm:$0xff] }
  0x91   : > { %v2270_v33 = vsel %vm453_vm0, %v3312_v44, 0.0  ;;  %v2288_v2 = vld [vmem:[%s1797_s26 + $0x188] sm:$0xff]  ;;  %v2304_v49 = vld [vmem:[%s1790_s28 + $0x1f0] sm:$0xff]  ;;  %v2307_v32 = vld [vmem:[%s1790_s28 + $0x1f8] sm:$0xff]  ;;  %v3316_v44 = vsub.f32 %v1848_v27, %v1955_v6  ;;  %v3317_v6 = vsub.f32 %v1851_v28, %v1958_v7  ;;  %v3318_v28 = vsub.f32 %v1854_v29, %v1961_v8 }
  0x92   : > { %3313 = vst [vmem:[#allocation59_spill] sm:$0xff] %v2270_v33  ;;  %v3314_v33 = vsub.f32 %v1842_v24, %v1933_v62  ;;  %v2310_v23 = vld [vmem:[%s1797_s26 + $0x190] sm:$0xff]  ;;  %v2313_v61 = vld [vmem:[%s1797_s26 + $0x198] sm:$0xff]  ;;  %v2316_v53 = vld [vmem:[%s1797_s26 + $0x1a0] sm:$0xff]  ;;  %v429_v24 = vsub.f32 %v2148_v5, %v2282_v51  ;;  %v430_v62 = vsub.f32 %v2151_v17, %v2285_v60 }
  0x93   : > { %v2332_v59 = vld [vmem:[%s1797_s26 + $0x1a8] sm:$0xff]  ;;  %v2335_v12 = vld [vmem:[%s1797_s26 + $0x1b0] sm:$0xff]  ;;  %v2338_v5 = vld [vmem:[%s1797_s26 + $0x1b8] sm:$0xff]  ;;  %v432_v17 = vsub.f32 %v2179_v16, %v2310_v23  ;;  %v434_v27 = vsub.f32 %v2185_v54, %v2316_v53  ;;  %v2351_v51 = vsel %vm453_vm0, %v3317_v6, 0.0  ;;  %v2367_v7 = vsel %vm453_vm0, %v3318_v28, 0.0 }
  0x94   : > { %v2301_v45 = vsel %vm453_vm0, %v3314_v33, 0.0  ;;  %v431_v33 = vsub.f32 %v2154_v55, %v2288_v2  ;;  %v433_v55 = vsub.f32 %v2182_v19, %v2313_v61  ;;  %v374_v60 = vld [vmem:[%s1797_s26 + $0x1c0] sm:$0xff]  ;;  %v375_v2 = vld [vmem:[%s1797_s26 + $0x1c8] sm:$0xff]  ;;  %v435_v16 = vsub.f32 %v2210_v41, %v2332_v59  ;;  %v377_v53 = vld [vmem:[%s1797_s26 + $0x1d8] sm:$0xff] }
  0x95   : > { %3315 = vst [vmem:[#allocation60_spill] sm:$0xff] %v2301_v45  ;;  %v2329_v45 = vsel %vm453_vm0, %v3316_v44, 0.0  ;;  %v376_v44 = vld [vmem:[%s1797_s26 + $0x1d0] sm:$0xff]  ;;  %v436_v19 = vsub.f32 %v2213_v20, %v2335_v12  ;;  %v437_v54 = vsub.f32 %v2216_v42, %v2338_v5  ;;  %v378_v23 = vld [vmem:[%s1797_s26 + $0x1e0] sm:$0xff]  ;;  %v379_v61 = vld [vmem:[%s1797_s26 + $0x1e8] sm:$0xff]  ;;  %v438_v6 = vsub.f32 %v2242_v21, %v374_v60 }
  0x96   : > { %v439_v41 = vsub.f32 %v2245_v50, %v375_v2  ;;  %v440_v59 = vsub.f32 %v2248_v52, %v376_v44  ;;  %v3319_v12 = vsub.f32 %v1866_v37, %v1983_v18  ;;  %v380_v29 = vld [vmem:[%s1797_s26 + $0x1f0] sm:$0xff]  ;;  %v381_v8 = vld [vmem:[%s1797_s26 + $0x1f8] sm:$0xff]  ;;  %v441_v20 = vsub.f32 %v2273_v11, %v377_v53  ;;  %v3332_v53 = vld [vmem:[#allocation26_spill] sm:$0xff] }
  0x97   : > { %v442_v5 = vsub.f32 %v2276_v36, %v378_v23  ;;  %v443_v28 = vsub.f32 %v2279_v22, %v379_v61  ;;  %v3320_v50 = vsub.f32 %v1869_v38, %v1986_v25  ;;  %v444_v37 = vsub.f32 %v2304_v49, %v380_v29  ;;  %v3331_v44 = vld [vmem:[#allocation15_spill] sm:$0xff] }
  0x98   : > { %v2380_v42 = vsel %vm453_vm0, %v3319_v12, 0.0  ;;  %v445_v18 = vsub.f32 %v2307_v32, %v381_v8  ;;  %v3321_v52 = vsub.f32 %v1872_v39, %v1989_v26  ;;  %v3322_v36 = vsub.f32 %v1890_v47, %v2011_v43  ;;  %v3324_v32 = vld [vmem:[#allocation13_spill] sm:$0xff]  ;;  %v3325_v39 = vld [vmem:[#allocation22_spill] sm:$0xff]  ;;  %v3327_v47 = vld [vmem:[#allocation24_spill] sm:$0xff] }
  0x99   : > { %v2392_v21 = vsel %vm453_vm0, %v3320_v50, 0.0  ;;  %v3323_v25 = vsub.f32 %v1893_v48, %v2014_v30  ;;  %v3326_v26 = vsub.f32 %v3324_v32, %v3325_v39  ;;  %v3328_v43 = vsub.f32 %v1918_v57, %v3327_v47  ;;  %v3329_v48 = vld [vmem:[#allocation25_spill] sm:$0xff]  ;;  %v3334_v57 = vld [vmem:[#allocation31_spill] sm:$0xff] }
  0x9a   : > { %v2401_v11 = vsel %vm453_vm0, %v3321_v52, 0.0  ;;  %v2408_v38 = vsel %vm453_vm0, %v3322_v36, 0.0  ;;  %v3330_v30 = vsub.f32 %v1921_v58, %v3329_v48  ;;  %v3333_v23 = vsub.f32 %v3331_v44, %v3332_v53  ;;  %v3336_v58 = vld [vmem:[#allocation32_spill] sm:$0xff]  ;;  %v3338_v52 = vld [vmem:[#allocation17_spill] sm:$0xff]  ;;  %v3345_v48 = vld [vmem:[#allocation19_spill] sm:$0xff] }
  0x9b   : > { %v2415_v49 = vsel %vm453_vm0, %v3323_v25, 0.0  ;;  %v2422_v22 = vsel %vm453_vm0, %v3326_v26, 0.0  ;;  %v2429_v60 = vsel %vm453_vm0, %v3328_v43, 0.0  ;;  %v3335_v12 = vsub.f32 %v1946_v3, %v3334_v57  ;;  %v3339_v36 = vld [vmem:[#allocation33_spill] sm:$0xff]  ;;  %v3341_v3 = vld [vmem:[#allocation36_spill] sm:$0xff] }
  0x9c   : > { %v2436_v2 = vsel %vm453_vm0, %v3330_v30, 0.0  ;;  %v2443_v61 = vsel %vm453_vm0, %v3333_v23, 0.0  ;;  %v3337_v8 = vsub.f32 %v1949_v4, %v3336_v58  ;;  %v3340_v25 = vsub.f32 %v3338_v52, %v3339_v36  ;;  %v3343_v4 = vld [vmem:[#allocation37_spill] sm:$0xff]  ;;  %v3346_v30 = vld [vmem:[#allocation38_spill] sm:$0xff]  ;;  %v3353_v52 = vld [vmem:[#allocation43_spill] sm:$0xff] }
  0x9d   : > { %v2450_v29 = vsel %vm453_vm0, %v3335_v12, 0.0  ;;  %v3342_v39 = vsub.f32 %v1974_v14, %v3341_v3  ;;  %v3344_v47 = vsub.f32 %v1977_v15, %v3343_v4  ;;  %v3347_v44 = vsub.f32 %v3345_v48, %v3346_v30  ;;  %v3348_v14 = vld [vmem:[#allocation41_spill] sm:$0xff]  ;;  %v3350_v15 = vld [vmem:[#allocation42_spill] sm:$0xff] }
  0x9e   : > { %v2457_v50 = vsel %vm453_vm0, %v3337_v8, 0.0  ;;  %v2464_v32 = vsel %vm453_vm0, %v3340_v25, 0.0  ;;  %v3349_v23 = vsub.f32 %v2002_v34, %v3348_v14  ;;  %v3351_v12 = vsub.f32 %v2005_v40, %v3350_v15  ;;  %v3352_v8 = vld [vmem:[#allocation21_spill] sm:$0xff]  ;;  %v3357_v40 = vld [vmem:[#allocation46_spill] sm:$0xff] }
  0x9f   : > { %v2471_v26 = vsel %vm453_vm0, %v3342_v39, 0.0  ;;  %v2478_v43 = vsel %vm453_vm0, %v3344_v47, 0.0  ;;  %v2485_v53 = vsel %vm453_vm0, %v3347_v44, 0.0  ;;  %v3354_v36 = vsub.f32 %v3352_v8, %v3353_v52  ;;  %v3355_v34 = vld [vmem:[#allocation45_spill] sm:$0xff]  ;;  %v3359_v47 = vld [vmem:[#allocation47_spill] sm:$0xff]  ;;  %v3361_v44 = vld [vmem:[#allocation28_spill] sm:$0xff] }
  0xa0   : > { %v2492_v57 = vsel %vm454_vm1, %v3349_v23, 0.0  ;;  %v2499_v58 = vsel %vm454_vm1, %v3351_v12, 0.0  ;;  %v3356_v25 = vsub.f32 %v2030_v10, %v3355_v34  ;;  %v3358_v39 = vsub.f32 %v2033_v1, %v3357_v40  ;;  %v3362_v10 = vld [vmem:[#allocation49_spill] sm:$0xff]  ;;  %v3365_v1 = vld [vmem:[#allocation50_spill] sm:$0xff] }
  0xa1   : > { %v2506_v9 = vsel %vm454_vm1, %v3354_v36, 0.0  ;;  %v3360_v48 = vsub.f32 %v2036_v0, %v3359_v47  ;;  %v3363_v14 = vsub.f32 %v3361_v44, %v3362_v10  ;;  %v3364_v15 = vld [vmem:[#allocation29_spill] sm:$0xff]  ;;  %v3367_v52 = vld [vmem:[#allocation30_spill] sm:$0xff]  ;;  %v3368_v0 = vld [vmem:[#allocation51_spill] sm:$0xff] }
  0xa2   : > { %v2513_v3 = vsel %vm454_vm1, %v3356_v25, 0.0  ;;  %v2520_v4 = vsel %vm454_vm1, %v3358_v39, 0.0  ;;  %v3366_v12 = vsub.f32 %v3364_v15, %v3365_v1  ;;  %v3369_v36 = vsub.f32 %v3367_v52, %v3368_v0  ;;  %v3370_v25 = vld [vmem:[#allocation53_spill] sm:$0xff]  ;;  %v3372_v47 = vld [vmem:[#allocation54_spill] sm:$0xff]  ;;  %v3374_v10 = vld [vmem:[#allocation35_spill] sm:$0xff] }
  0xa3   : > { %v2527_v30 = vsel %vm454_vm1, %v3360_v48, 0.0  ;;  %v2534_v23 = vsel %vm454_vm1, %v3363_v14, 0.0  ;;  %v3371_v40 = vsub.f32 %v2086_v56, %v3370_v25  ;;  %v3373_v48 = vsub.f32 %v2089_v31, %v3372_v47  ;;  %v3375_v14 = vld [vmem:[#allocation55_spill] sm:$0xff]  ;;  %v3378_v31 = vld [vmem:[#allocation57_spill] sm:$0xff]  ;;  %v3381_v25 = vld [vmem:[#allocation58_spill] sm:$0xff] }
  0xa4   : > { %v2541_v8 = vsel %vm454_vm1, %v3366_v12, 0.0  ;;  %v2548_v34 = vsel %vm454_vm1, %v3369_v36, 0.0  ;;  %v3376_v15 = vsub.f32 %v3374_v10, %v3375_v14  ;;  %v3377_v56 = vsub.f32 %v2117_v63, %v2251_v13  ;;  %v3380_v36 = vld [vmem:[#allocation40_spill] sm:$0xff]  ;;  %v3383_v14 = vld [vmem:[#allocation14_spill] sm:$0xff] }
  0xa5   : > { %v2555_v39 = vsel %vm454_vm1, %v3371_v40, 0.0  ;;  %v2562_v44 = vsel %vm454_vm1, %v3373_v48, 0.0  ;;  %v3379_v52 = vsub.f32 %v2120_v46, %v3378_v31  ;;  %v3382_v40 = vsub.f32 %v3380_v36, %v3381_v25  ;;  %v3386_v31 = vld [vmem:[#allocation20_spill] sm:$0xff]  ;;  %v3392_v25 = vld [vmem:[#allocation34_spill] sm:$0xff] }
  0xa6   : > { %v2569_v1 = vsel %vm454_vm1, %v3376_v15, 0.0  ;;  %v2576_v12 = vsel %vm454_vm1, %v3377_v56, 0.0  ;;  %v2594_v63 = vsel %vm454_vm1, %v429_v24, 0.0  ;;  %v2598_v13 = vsel %vm454_vm1, %v430_v62, 0.0  ;;  %v3384_v15 = vld [vmem:[#allocation16_spill] sm:$0xff]  ;;  %v3385_v56 = vld [vmem:[#allocation18_spill] sm:$0xff] }
  0xa7   : > { %v2583_v0 = vsel %vm454_vm1, %v3379_v52, 0.0  ;;  %v2590_v47 = vsel %vm454_vm1, %v3382_v40, 0.0  ;;  %v2602_v46 = vsel %vm454_vm1, %v431_v33, 0.0  ;;  %v2606_v48 = vsel %vm454_vm1, %v432_v17, 0.0  ;;  %v3388_v52 = vld [vmem:[#allocation23_spill] sm:$0xff] }
  0xa8   : > { %v2610_v10 = vsel %vm454_vm1, %v433_v55, 0.0  ;;  %v2614_v24 = vsel %vm454_vm1, %v434_v27, 0.0  ;;  %v2618_v62 = vsel %vm454_vm1, %v435_v16, 0.0  ;;  %v2622_v33 = vsel %vm454_vm1, %v436_v19, 0.0 }
  0xa9   : > { %v2626_v17 = vsel %vm454_vm1, %v437_v54, 0.0  ;;  %v2630_v55 = vsel %vm454_vm1, %v438_v6, 0.0  ;;  %v2634_v27 = vsel %vm454_vm1, %v439_v41, 0.0  ;;  %v2638_v16 = vsel %vm454_vm1, %v440_v59, 0.0 }
  0xaa   : > { %v2642_v19 = vsel %vm454_vm1, %v441_v20, 0.0  ;;  %v2646_v54 = vsel %vm454_vm1, %v442_v5, 0.0  ;;  %v2650_v6 = vsel %vm454_vm1, %v443_v28, 0.0  ;;  %v2654_v41 = vsel %vm454_vm1, %v444_v37, 0.0 }
  0xab   : > { %v2658_v59 = vsel %vm454_vm1, %v445_v18, 0.0  ;;  %v2662_v20 = vmul.f32 %v3383_v14, %v3383_v14  ;;  %v2666_v5 = vmul.f32 %v3384_v15, %v3384_v15  ;;  %v2670_v28 = vmul.f32 %v3385_v56, %v3385_v56  ;;  %v3390_v18 = vld [vmem:[#allocation27_spill] sm:$0xff]  ;;  %v3396_v56 = vld [vmem:[#allocation44_spill] sm:$0xff] }
  0xac   : > { %v2674_v37 = vmul.f32 %v3386_v31, %v3386_v31  ;;  %v2678_v35 = vmul.f32 %v3388_v52, %v3388_v52  ;;  %v2682_v36 = vmul.f32 %v3390_v18, %v3390_v18  ;;  %v2686_v40 = vmul.f32 %v3392_v25, %v3392_v25  ;;  %v3394_v14 = vld [vmem:[#allocation39_spill] sm:$0xff] }
  0xad   : > { %v2690_v15 = vmul.f32 %v3394_v14, %v3394_v14  ;;  %v2694_v31 = vmul.f32 %v3396_v56, %v3396_v56 }
  0xae   : > { %3387 = vst [vmem:[#allocation13_spill] sm:$0xff] %v2674_v37  ;;  %3389 = vst [vmem:[#allocation22_spill] sm:$0xff] %v2678_v35  ;;  %v3397_v37 = vld [vmem:[#allocation48_spill] sm:$0xff] }
  0xaf   : > { %3391 = vst [vmem:[#allocation24_spill] sm:$0xff] %v2682_v36  ;;  %3393 = vst [vmem:[#allocation25_spill] sm:$0xff] %v2686_v40  ;;  %v2698_v52 = vmul.f32 %v3397_v37, %v3397_v37  ;;  %v3398_v35 = vld [vmem:[#allocation52_spill] sm:$0xff]  ;;  %v3400_v40 = vld [vmem:[#allocation59_spill] sm:$0xff]  ;;  %v2718_v37 = vmul.f32 %v2329_v45, %v2329_v45  ;;  %v2738_v45 = vmul.f32 %v2401_v11, %v2401_v11 }
  0xb0   : > { %3395 = vst [vmem:[#allocation15_spill] sm:$0xff] %v2690_v15  ;;  %v2702_v18 = vmul.f32 %v3398_v35, %v3398_v35  ;;  %v3399_v36 = vld [vmem:[#allocation56_spill] sm:$0xff]  ;;  %v2710_v14 = vmul.f32 %v3400_v40, %v3400_v40  ;;  %v2722_v35 = vmul.f32 %v2351_v51, %v2351_v51  ;;  %v2730_v40 = vmul.f32 %v2380_v42, %v2380_v42 }
  0xb1   : > { %v2706_v25 = vmul.f32 %v3399_v36, %v3399_v36  ;;  %v3401_v15 = vld [vmem:[#allocation60_spill] sm:$0xff]  ;;  %v2726_v36 = vmul.f32 %v2367_v7, %v2367_v7  ;;  %v2742_v51 = vmul.f32 %v2408_v38, %v2408_v38  ;;  %v2746_v7 = vmul.f32 %v2415_v49, %v2415_v49 }
  0xb2   : > { %v2714_v56 = vmul.f32 %v3401_v15, %v3401_v15  ;;  %v2734_v15 = vmul.f32 %v2392_v21, %v2392_v21  ;;  %v2750_v42 = vmul.f32 %v2422_v22, %v2422_v22  ;;  %v2754_v21 = vmul.f32 %v2429_v60, %v2429_v60 }
  0xb3   : > { %v2758_v11 = vmul.f32 %v2436_v2, %v2436_v2  ;;  %v2762_v38 = vmul.f32 %v2443_v61, %v2443_v61  ;;  %v2766_v49 = vmul.f32 %v2450_v29, %v2450_v29  ;;  %v2770_v22 = vmul.f32 %v2457_v50, %v2457_v50 }
  0xb4   : > { %3402 = vst [vmem:[#allocation26_spill] sm:$0xff] %v2750_v42  ;;  %3403 = vst [vmem:[#allocation31_spill] sm:$0xff] %v2754_v21  ;;  %v2774_v60 = vmul.f32 %v2464_v32, %v2464_v32  ;;  %v2778_v2 = vmul.f32 %v2471_v26, %v2471_v26  ;;  %v2782_v61 = vmul.f32 %v2478_v43, %v2478_v43 }
  0xb5   : > { %3404 = vst [vmem:[#allocation32_spill] sm:$0xff] %v2758_v11  ;;  %3405 = vst [vmem:[#allocation17_spill] sm:$0xff] %v2762_v38  ;;  %v2786_v29 = vmul.f32 %v2485_v53, %v2485_v53  ;;  %v551_v50 = vmul.f32 %v2492_v57, %v2492_v57  ;;  %v553_v32 = vmul.f32 %v2506_v9, %v2506_v9 }
  0xb6   : > { %3406 = vst [vmem:[#allocation33_spill] sm:$0xff] %v2766_v49  ;;  %3407 = vst [vmem:[#allocation36_spill] sm:$0xff] %v2770_v22  ;;  %v552_v22 = vmul.f32 %v2499_v58, %v2499_v58  ;;  %v554_v26 = vmul.f32 %v2513_v3, %v2513_v3  ;;  %v555_v43 = vmul.f32 %v2520_v4, %v2520_v4  ;;  %v3415_v11 = vld [vmem:[#allocation25_spill] sm:$0xff] }
  0xb7   : > { %3408 = vst [vmem:[#allocation37_spill] sm:$0xff] %v2774_v60  ;;  %3409 = vst [vmem:[#allocation19_spill] sm:$0xff] %v2778_v2  ;;  %v557_v53 = vmul.f32 %v2534_v23, %v2534_v23  ;;  %v558_v57 = vmul.f32 %v2541_v8, %v2541_v8  ;;  %v559_v58 = vmul.f32 %v2548_v34, %v2548_v34  ;;  %v3412_v2 = vld [vmem:[#allocation13_spill] sm:$0xff]  ;;  %v3413_v60 = vld [vmem:[#allocation22_spill] sm:$0xff] }
  0xb8   : > { %3410 = vst [vmem:[#allocation38_spill] sm:$0xff] %v2782_v61  ;;  %3411 = vst [vmem:[#allocation41_spill] sm:$0xff] %v2786_v29  ;;  %v556_v61 = vmul.f32 %v2527_v30, %v2527_v30  ;;  %v560_v9 = vmul.f32 %v2555_v39, %v2555_v39  ;;  %v561_v3 = vmul.f32 %v2562_v44, %v2562_v44  ;;  %v3416_v21 = vld [vmem:[#allocation15_spill] sm:$0xff] }
  0xb9   : > { %v562_v4 = vmul.f32 %v2569_v1, %v2569_v1  ;;  %v563_v30 = vmul.f32 %v2576_v12, %v2576_v12  ;;  %v564_v23 = vmul.f32 %v2583_v0, %v2583_v0  ;;  %v565_v8 = vmul.f32 %v2590_v47, %v2590_v47 }
  0xba   : > { %v566_v34 = vmul.f32 %v2594_v63, %v2594_v63  ;;  %v567_v39 = vmul.f32 %v2598_v13, %v2598_v13  ;;  %v568_v44 = vmul.f32 %v2602_v46, %v2602_v46  ;;  %v569_v1 = vmul.f32 %v2606_v48, %v2606_v48 }
  0xbb   : > { %v570_v12 = vmul.f32 %v2610_v10, %v2610_v10  ;;  %v571_v0 = vmul.f32 %v2614_v24, %v2614_v24  ;;  %v572_v47 = vmul.f32 %v2618_v62, %v2618_v62  ;;  %v573_v63 = vmul.f32 %v2622_v33, %v2622_v33 }
  0xbc   : > { %v574_v13 = vmul.f32 %v2626_v17, %v2626_v17  ;;  %v575_v46 = vmul.f32 %v2630_v55, %v2630_v55  ;;  %v576_v48 = vmul.f32 %v2634_v27, %v2634_v27  ;;  %v577_v10 = vmul.f32 %v2638_v16, %v2638_v16 }
  0xbd   : > { %v578_v24 = vmul.f32 %v2642_v19, %v2642_v19  ;;  %v579_v62 = vmul.f32 %v2646_v54, %v2646_v54  ;;  %v580_v33 = vmul.f32 %v2650_v6, %v2650_v6  ;;  %v581_v17 = vmul.f32 %v2654_v41, %v2654_v41  ;;  %v3414_v54 = vld [vmem:[#allocation24_spill] sm:$0xff] }
  0xbe   : > { %v582_v55 = vmul.f32 %v2658_v59, %v2658_v59  ;;  %v583_v27 = vadd.f32 %v551_v50, %v2662_v20  ;;  %v584_v29 = vadd.f32 %v552_v22, %v2666_v5  ;;  %v585_v16 = vadd.f32 %v553_v32, %v2670_v28 }
  0xbf   : > { %v586_v19 = vadd.f32 %v554_v26, %v3412_v2  ;;  %v587_v49 = vadd.f32 %v555_v43, %v3413_v60  ;;  %v588_v38 = vadd.f32 %v556_v61, %v3414_v54  ;;  %v589_v6 = vadd.f32 %v557_v53, %v3415_v11  ;;  %v3424_v43 = vld [vmem:[#allocation19_spill] sm:$0xff] }
  0xc0   : > { %v590_v42 = vadd.f32 %v558_v57, %v3416_v21  ;;  %v2861_v41 = vadd.f32 %v559_v58, %v2694_v31  ;;  %v2864_v59 = vadd.f32 %v560_v9, %v2698_v52  ;;  %v2867_v20 = vadd.f32 %v561_v3, %v2702_v18  ;;  %v3425_v57 = vld [vmem:[#allocation38_spill] sm:$0xff]  ;;  %v3426_v9 = vld [vmem:[#allocation41_spill] sm:$0xff] }
  0xc1   : > { %v2870_v5 = vadd.f32 %v562_v4, %v2706_v25  ;;  %v2873_v28 = vadd.f32 %v563_v30, %v2710_v14  ;;  %v2876_v22 = vadd.f32 %v564_v23, %v2714_v56  ;;  %v2879_v21 = vadd.f32 %v565_v8, %v2718_v37 }
  0xc2   : > { %v2882_v31 = vadd.f32 %v566_v34, %v2722_v35  ;;  %v2885_v52 = vadd.f32 %v567_v39, %v2726_v36  ;;  %v2888_v18 = vadd.f32 %v568_v44, %v2730_v40  ;;  %v2891_v25 = vadd.f32 %v569_v1, %v2734_v15  ;;  %v3417_v35 = vld [vmem:[#allocation26_spill] sm:$0xff]  ;;  %v3418_v36 = vld [vmem:[#allocation31_spill] sm:$0xff]  ;;  %v3419_v40 = vld [vmem:[#allocation32_spill] sm:$0xff] }
  0xc3   : > { %v2894_v14 = vadd.f32 %v570_v12, %v2738_v45  ;;  %v2897_v56 = vadd.f32 %v571_v0, %v2742_v51  ;;  %v2900_v37 = vadd.f32 %v572_v47, %v2746_v7  ;;  %v2903_v11 = vadd.f32 %v573_v63, %v3417_v35  ;;  %v3420_v15 = vld [vmem:[#allocation17_spill] sm:$0xff]  ;;  %v3422_v51 = vld [vmem:[#allocation36_spill] sm:$0xff]  ;;  %v3427_v39 = vld [vmem:[#allocation11_spill] sm:$0xff] }
  0xc4   : > { %v2906_v60 = vadd.f32 %v574_v13, %v3418_v36  ;;  %v2909_v2 = vadd.f32 %v575_v46, %v3419_v40  ;;  %v2912_v61 = vadd.f32 %v576_v48, %v3420_v15  ;;  %v3421_v45 = vld [vmem:[#allocation33_spill] sm:$0xff]  ;;  %v2918_v32 = vadd.f32 %v578_v24, %v3422_v51 }
  0xc5   : > { %v2915_v50 = vadd.f32 %v577_v10, %v3421_v45  ;;  %v3423_v7 = vld [vmem:[#allocation37_spill] sm:$0xff]  ;;  %v2924_v53 = vadd.f32 %v580_v33, %v3424_v43  ;;  %v2927_v58 = vadd.f32 %v581_v17, %v3425_v57  ;;  %v2930_v3 = vadd.f32 %v582_v55, %v3426_v9 }
  0xc6   : > { %v2921_v26 = vadd.f32 %v579_v62, %v3423_v7  ;;  %v615_v4 = vcombine.low %v583_v27, %v585_v16  ;;  %v616_v30 = vcombine.high %v583_v27, %v585_v16  ;;  %v631_v23 = vcombine.low %v584_v29, %v586_v19  ;;  %v3428_v16 = vld [vmem:[#allocation12_spill] sm:$0xff] }
  0xc7   : > { %v632_v8 = vcombine.high %v584_v29, %v586_v19  ;;  %v647_v34 = vcombine.low %v587_v49, %v589_v6  ;;  %v648_v1 = vcombine.high %v587_v49, %v589_v6  ;;  %v663_v12 = vcombine.low %v588_v38, %v590_v42 }
  0xc8   : > { %v623_v44 = vrot.slane %v615_v4, %v3427_v39  ;;  %v664_v0 = vcombine.high %v588_v38, %v590_v42  ;;  %v630_v47 = vrot.slane %v616_v30, %v3427_v39  ;;  %v639_v63 = vrot.slane %v631_v23, %v3427_v39 }
  0xc9   : > { %v646_v13 = vrot.slane %v632_v8, %v3427_v39  ;;  %v655_v46 = vrot.slane %v647_v34, %v3427_v39  ;;  %v662_v48 = vrot.slane %v648_v1, %v3427_v39  ;;  %v671_v10 = vrot.slane %v663_v12, %v3427_v39 }
  0xca   : > { %v678_v29 = vrot.slane %v664_v0, %v3427_v39  ;;  %v751_v24 = vcombine.low %v2861_v41, %v2867_v20  ;;  %v679_v49 = vcombine.low %v623_v44, %v639_v63  ;;  %v680_v62 = vcombine.high %v623_v44, %v639_v63 }
  0xcb   : > { %v695_v42 = vcombine.low %v630_v47, %v646_v13  ;;  %v696_v38 = vcombine.high %v630_v47, %v646_v13  ;;  %v711_v33 = vcombine.low %v655_v46, %v671_v10  ;;  %v712_v17 = vcombine.high %v655_v46, %v671_v10 }
  0xcc   : > { %v727_v55 = vcombine.low %v662_v48, %v678_v29  ;;  %v728_v27 = vcombine.high %v662_v48, %v678_v29  ;;  %v2943_v19 = vrot.slane %v679_v49, %v3428_v16  ;;  %v2946_v54 = vrot.slane %v680_v62, %v3428_v16 }
  0xcd   : > { %v2949_v6 = vrot.slane %v695_v42, %v3428_v16  ;;  %v2952_v35 = vrot.slane %v696_v38, %v3428_v16  ;;  %v2955_v36 = vrot.slane %v711_v33, %v3428_v16  ;;  %v2958_v40 = vrot.slane %v712_v17, %v3428_v16 }
  0xce   : > { %v2961_v15 = vrot.slane %v727_v55, %v3428_v16  ;;  %v2964_v45 = vrot.slane %v728_v27, %v3428_v16  ;;  %v752_v51 = vcombine.high %v2861_v41, %v2867_v20  ;;  %v759_v7 = vrot.slane %v751_v24, %v3427_v39 }
  0xcf   : > { %v767_v43 = vcombine.low %v2864_v59, %v2870_v5  ;;  %v768_v57 = vcombine.high %v2864_v59, %v2870_v5  ;;  %v743_v9 = vcombine.low %v2943_v19, %v2955_v36  ;;  %v744_v4 = vcombine.high %v2943_v19, %v2955_v36 }
  0xd0   : > { %v745_v30 = vcombine.low %v2946_v54, %v2958_v40  ;;  %v746_v41 = vcombine.high %v2946_v54, %v2958_v40  ;;  %v747_v20 = vcombine.low %v2949_v6, %v2961_v15  ;;  %v748_v23 = vcombine.high %v2949_v6, %v2961_v15 }
  0xd1   : > { %v749_v59 = vcombine.low %v2952_v35, %v2964_v45  ;;  %v750_v5 = vcombine.high %v2952_v35, %v2964_v45  ;;  %v766_v8 = vrot.slane %v752_v51, %v3427_v39  ;;  %v775_v34 = vrot.slane %v767_v43, %v3427_v39 }
  0xd2   : > { %v782_v44 = vrot.slane %v768_v57, %v3427_v39  ;;  %v783_v1 = vcombine.low %v2873_v28, %v2879_v21  ;;  %v784_v12 = vcombine.high %v2873_v28, %v2879_v21  ;;  %v799_v0 = vcombine.low %v2876_v22, %v2882_v31 }
  0xd3   : > { %v800_v47 = vcombine.high %v2876_v22, %v2882_v31  ;;  %v887_v63 = vcombine.low %v2885_v52, %v2891_v25  ;;  %v815_v46 = vcombine.low %v759_v7, %v775_v34  ;;  %v816_v48 = vcombine.high %v759_v7, %v775_v34 }
  0xd4   : > { %v791_v13 = vrot.slane %v783_v1, %v3427_v39  ;;  %v831_v10 = vcombine.low %v766_v8, %v782_v44  ;;  %v798_v29 = vrot.slane %v784_v12, %v3427_v39  ;;  %v807_v24 = vrot.slane %v799_v0, %v3427_v39 }
  0xd5   : > { %v814_v28 = vrot.slane %v800_v47, %v3427_v39  ;;  %v832_v21 = vcombine.high %v766_v8, %v782_v44  ;;  %v3007_v49 = vrot.slane %v815_v46, %v3428_v16  ;;  %v3010_v22 = vrot.slane %v816_v48, %v3428_v16 }
  0xd6   : > { %v3013_v31 = vrot.slane %v831_v10, %v3428_v16  ;;  %v888_v62 = vcombine.high %v2885_v52, %v2891_v25  ;;  %v847_v38 = vcombine.low %v791_v13, %v807_v24  ;;  %v848_v33 = vcombine.high %v791_v13, %v807_v24 }
  0xd7   : > { %v3018_v42 = vrot.slane %v832_v21, %v3428_v16  ;;  %v863_v17 = vcombine.low %v798_v29, %v814_v28  ;;  %v864_v55 = vcombine.high %v798_v29, %v814_v28  ;;  %v895_v27 = vrot.slane %v887_v63, %v3427_v39 }
  0xd8   : > { %v902_v51 = vrot.slane %v888_v62, %v3427_v39  ;;  %v903_v7 = vcombine.low %v2888_v18, %v2894_v14  ;;  %v3025_v43 = vrot.slane %v847_v38, %v3428_v16  ;;  %v3028_v57 = vrot.slane %v848_v33, %v3428_v16 }
  0xd9   : > { %v3031_v52 = vrot.slane %v863_v17, %v3428_v16  ;;  %v904_v25 = vcombine.high %v2888_v18, %v2894_v14  ;;  %v3036_v8 = vrot.slane %v864_v55, %v3428_v16  ;;  %v919_v44 = vcombine.low %v2897_v56, %v2903_v11 }
  0xda   : > { %v911_v34 = vrot.slane %v903_v7, %v3427_v39  ;;  %v920_v1 = vcombine.high %v2897_v56, %v2903_v11  ;;  %v879_v12 = vcombine.low %v3007_v49, %v3025_v43  ;;  %v880_v0 = vcombine.high %v3007_v49, %v3025_v43 }
  0xdb   : > { %v881_v18 = vcombine.low %v3010_v22, %v3028_v57  ;;  %v882_v14 = vcombine.high %v3010_v22, %v3028_v57  ;;  %v883_v47 = vcombine.low %v3013_v31, %v3031_v52  ;;  %v884_v63 = vcombine.high %v3013_v31, %v3031_v52 }
  0xdc   : > { %v885_v56 = vcombine.low %v3018_v42, %v3036_v8  ;;  %v886_v11 = vcombine.high %v3018_v42, %v3036_v8  ;;  %v918_v13 = vrot.slane %v904_v25, %v3427_v39  ;;  %v927_v46 = vrot.slane %v919_v44, %v3427_v39 }
  0xdd   : > { %v934_v48 = vrot.slane %v920_v1, %v3427_v39  ;;  %v935_v10 = vcombine.low %v2900_v37, %v2906_v60  ;;  %v936_v29 = vcombine.high %v2900_v37, %v2906_v60  ;;  %v951_v24 = vcombine.low %v895_v27, %v911_v34 }
  0xde   : > { %v952_v28 = vcombine.high %v895_v27, %v911_v34  ;;  %v1023_v21 = vcombine.low %v2909_v2, %v2915_v50  ;;  %v967_v62 = vcombine.low %v902_v51, %v918_v13  ;;  %v968_v38 = vcombine.high %v902_v51, %v918_v13 }
  0xdf   : > { %v943_v49 = vrot.slane %v935_v10, %v3427_v39  ;;  %v1024_v33 = vcombine.high %v2909_v2, %v2915_v50  ;;  %v950_v17 = vrot.slane %v936_v29, %v3427_v39  ;;  %v959_v55 = vrot.slane %v951_v24, %v3428_v16 }
  0xe0   : > { %v3074_v7 = vrot.slane %v952_v28, %v3428_v16  ;;  %v1031_v37 = vrot.slane %v1023_v21, %v3427_v39  ;;  %v3078_v60 = vrot.slane %v967_v62, %v3428_v16  ;;  %v3081_v27 = vrot.slane %v968_v38, %v3428_v16 }
  0xe1   : > { %v983_v43 = vcombine.low %v927_v46, %v943_v49  ;;  %v984_v51 = vcombine.high %v927_v46, %v943_v49  ;;  %v999_v25 = vcombine.low %v934_v48, %v950_v17  ;;  %v1000_v34 = vcombine.high %v934_v48, %v950_v17 }
  0xe2   : > { %v1038_v2 = vrot.slane %v1024_v33, %v3427_v39  ;;  %v1039_v50 = vcombine.low %v2912_v61, %v2918_v32  ;;  %v1040_v13 = vcombine.high %v2912_v61, %v2918_v32  ;;  %v1055_v10 = vcombine.low %v2921_v26, %v2927_v58 }
  0xe3   : > { %v991_v44 = vrot.slane %v983_v43, %v3428_v16  ;;  %v998_v1 = vrot.slane %v984_v51, %v3428_v16  ;;  %v1007_v29 = vrot.slane %v999_v25, %v3428_v16  ;;  %v3094_v46 = vrot.slane %v1000_v34, %v3428_v16 }
  0xe4   : > { %v1047_v48 = vrot.slane %v1039_v50, %v3427_v39  ;;  %v1056_v24 = vcombine.high %v2921_v26, %v2927_v58  ;;  %v1054_v17 = vrot.slane %v1040_v13, %v3427_v39  ;;  %v1063_v26 = vrot.slane %v1055_v10, %v3427_v39 }
  0xe5   : > { %v1015_v28 = vcombine.low %v959_v55, %v991_v44  ;;  %v1016_v21 = vcombine.high %v959_v55, %v991_v44  ;;  %v1017_v49 = vcombine.low %v3074_v7, %v998_v1  ;;  %v1018_v62 = vcombine.high %v3074_v7, %v998_v1 }
  0xe6   : > { %v1019_v61 = vcombine.low %v3078_v60, %v1007_v29  ;;  %v1020_v32 = vcombine.high %v3078_v60, %v1007_v29  ;;  %v1021_v38 = vcombine.low %v3081_v27, %v3094_v46  ;;  %v1022_v33 = vcombine.high %v3081_v27, %v3094_v46 }
  0xe7   : > { %v1070_v58 = vrot.slane %v1056_v24, %v3427_v39  ;;  %v1071_v55 = vcombine.low %v2924_v53, %v2930_v3  ;;  %v1072_v7 = vcombine.high %v2924_v53, %v2930_v3  ;;  %v1087_v43 = vcombine.low %v1031_v37, %v1047_v48 }
  0xe8   : > { %v1088_v60 = vcombine.high %v1031_v37, %v1047_v48  ;;  %v1159_v51 = vadd.f32 %v879_v12, %v743_v9  ;;  %v1103_v25 = vcombine.low %v1038_v2, %v1054_v17  ;;  %v1104_v34 = vcombine.high %v1038_v2, %v1054_v17 }
  0xe9   : > { %v1079_v27 = vrot.slane %v1071_v55, %v3427_v39  ;;  %v1168_v50 = vadd.f32 %v880_v0, %v744_v4  ;;  %v1086_v44 = vrot.slane %v1072_v7, %v3427_v39  ;;  %v1095_v1 = vrot.slane %v1087_v43, %v3428_v16 }
  0xea   : > { %v1102_v53 = vrot.slane %v1088_v60, %v3428_v16  ;;  %v1160_v3 = vadd.f32 %v1159_v51, %v1015_v28  ;;  %v1111_v37 = vrot.slane %v1103_v25, %v3428_v16  ;;  %v1118_v13 = vrot.slane %v1104_v34, %v3428_v16 }
  0xeb   : > { %v1119_v9 = vcombine.low %v1063_v26, %v1079_v27  ;;  %v1120_v12 = vcombine.high %v1063_v26, %v1079_v27  ;;  %v1135_v10 = vcombine.low %v1070_v58, %v1086_v44  ;;  %v1136_v29 = vcombine.high %v1070_v58, %v1086_v44 }
  0xec   : > { %v1169_v2 = vadd.f32 %v1168_v50, %v1016_v21  ;;  %v1177_v39 = vadd.f32 %v881_v18, %v745_v30  ;;  %v1186_v4 = vadd.f32 %v882_v14, %v746_v41  ;;  %v1195_v0 = vadd.f32 %v883_v47, %v747_v20 }
  0xed   : > { %v1127_v19 = vrot.slane %v1119_v9, %v3428_v16  ;;  %v1134_v36 = vrot.slane %v1120_v12, %v3428_v16  ;;  %v1143_v30 = vrot.slane %v1135_v10, %v3428_v16  ;;  %v1150_v18 = vrot.slane %v1136_v29, %v3428_v16 }
  0xee   : > { %v1178_v46 = vadd.f32 %v1177_v39, %v1017_v49  ;;  %v1204_v54 = vadd.f32 %v884_v63, %v748_v23  ;;  %v1187_v16 = vadd.f32 %v1186_v4, %v1018_v62  ;;  %v1196_v49 = vadd.f32 %v1195_v0, %v1019_v61 }
  0xef   : > { %v1151_v40 = vcombine.low %v1095_v1, %v1127_v19  ;;  %v1152_v41 = vcombine.high %v1095_v1, %v1127_v19  ;;  %v1153_v22 = vcombine.low %v1102_v53, %v1134_v36  ;;  %v1154_v57 = vcombine.high %v1102_v53, %v1134_v36 }
  0xf0   : > { %v1155_v14 = vcombine.low %v1111_v37, %v1143_v30  ;;  %v1156_v48 = vcombine.high %v1111_v37, %v1143_v30  ;;  %v1157_v24 = vcombine.low %v1118_v13, %v1150_v18  ;;  %v1158_v20 = vcombine.high %v1118_v13, %v1150_v18 }
  0xf1   : > { %v1161_v47 = vadd.f32 %v1160_v3, %v1151_v40  ;;  %v1170_v28 = vadd.f32 %v1169_v2, %v1152_v41  ;;  %v1179_v21 = vadd.f32 %v1178_v46, %v1153_v22  ;;  %v1205_v17 = vadd.f32 %v1204_v54, %v1020_v32 }
  0xf2   : > { %v1213_v6 = vadd.f32 %v885_v56, %v749_v59  ;;  %v1222_v15 = vadd.f32 %v886_v11, %v750_v5  ;;  %v1188_v63 = vadd.f32 %v1187_v16, %v1154_v57  ;;  %v1197_v62 = vadd.f32 %v1196_v49, %v1155_v14 }
  0xf3   : > { %v1162_v23 = vrot.slane %v1161_v47, 4  ;;  %v1171_v31 = vrot.slane %v1170_v28, 4  ;;  %v1180_v52 = vrot.slane %v1179_v21, 4  ;;  %v1206_v61 = vadd.f32 %v1205_v17, %v1156_v48 }
  0xf4   : > { %v1214_v32 = vadd.f32 %v1213_v6, %v1021_v38  ;;  %v1223_v26 = vadd.f32 %v1222_v15, %v1022_v33  ;;  %v1189_v59 = vrot.slane %v1188_v63, 4  ;;  %v1198_v56 = vrot.slane %v1197_v62, 4 }
  0xf5   : > { %v1163_v58 = vadd.f32 %v1162_v23, %v1161_v47  ;;  %v1172_v55 = vadd.f32 %v1171_v31, %v1170_v28  ;;  %v1181_v7 = vadd.f32 %v1180_v52, %v1179_v21  ;;  %v1207_v43 = vrot.slane %v1206_v61, 4 }
  0xf6   : > { %v1215_v35 = vadd.f32 %v1214_v32, %v1157_v24  ;;  %v1224_v45 = vadd.f32 %v1223_v26, %v1158_v20  ;;  %v1190_v11 = vadd.f32 %v1189_v59, %v1188_v63  ;;  %v1199_v60 = vadd.f32 %v1198_v56, %v1197_v62 }
  0xf7   : > { %v1164_v42 = vrot.slane %v1163_v58, 2  ;;  %v1173_v5 = vrot.slane %v1172_v55, 2  ;;  %v1182_v8 = vrot.slane %v1181_v7, 2  ;;  %v1208_v51 = vadd.f32 %v1207_v43, %v1206_v61 }
  0xf8   : > { %v1216_v27 = vrot.slane %v1215_v35, 4  ;;  %v1225_v38 = vrot.slane %v1224_v45, 4  ;;  %v1191_v50 = vrot.slane %v1190_v11, 2  ;;  %v1200_v44 = vrot.slane %v1199_v60, 2 }
  0xf9   : > { %v1165_v33 = vadd.f32 %v1164_v42, %v1163_v58  ;;  %v1174_v25 = vadd.f32 %v1173_v5, %v1172_v55  ;;  %v1183_v34 = vadd.f32 %v1182_v8, %v1181_v7  ;;  %v1209_v1 = vrot.slane %v1208_v51, 2 }
  0xfa   : > { %v1217_v53 = vadd.f32 %v1216_v27, %v1215_v35  ;;  %v1226_v3 = vadd.f32 %v1225_v38, %v1224_v45  ;;  %v1192_v12 = vadd.f32 %v1191_v50, %v1190_v11  ;;  %v1201_v10 = vadd.f32 %v1200_v44, %v1199_v60 }
  0xfb   : > { %v1166_v37 = vrot.slane %v1165_v33, 1  ;;  %v1175_v13 = vrot.slane %v1174_v25, 1  ;;  %v1184_v9 = vrot.slane %v1183_v34, 1  ;;  %v1210_v29 = vadd.f32 %v1209_v1, %v1208_v51 }
  0xfc   : > { %v1218_v2 = vrot.slane %v1217_v53, 2  ;;  %v1227_v39 = vrot.slane %v1226_v3, 2  ;;  %v1193_v0 = vrot.slane %v1192_v12, 1  ;;  %v1202_v30 = vrot.slane %v1201_v10, 1 }
  0xfd   : > { %v1167_v19 = vadd.f32 %v1166_v37, %v1165_v33  ;;  %v1176_v36 = vadd.f32 %v1175_v13, %v1174_v25  ;;  %v1185_v4 = vadd.f32 %v1184_v9, %v1183_v34  ;;  %v1211_v18 = vrot.slane %v1210_v29, 1 }
  0xfe   : > { %v1219_v46 = vadd.f32 %v1218_v2, %v1217_v53  ;;  %v1228_v54 = vadd.f32 %v1227_v39, %v1226_v3  ;;  %v1194_v40 = vadd.f32 %v1193_v0, %v1192_v12  ;;  %v1203_v22 = vadd.f32 %v1202_v30, %v1201_v10 }
  0xff   : > { %v1240_v41 = vsel %vm1239_vm2, %v1176_v36, %v1167_v19  ;;  %v1212_v57 = vadd.f32 %v1211_v18, %v1210_v29 }
 0x100   : > { %v1220_v14 = vrot.slane %v1219_v46, 1  ;;  %v1229_v48 = vrot.slane %v1228_v54, 1  ;;  %v1242_v24 = vsel %vm1241_vm3, %v1185_v4, %v1240_v41 }
 0x101   : > { %v1244_v28 = vsel %vm1243_vm4, %v1194_v40, %v1242_v24 }
 0x102   : > { %v1221_v20 = vadd.f32 %v1220_v14, %v1219_v46  ;;  %v1230_v47 = vadd.f32 %v1229_v48, %v1228_v54  ;;  %v1246_v21 = vsel %vm1245_vm5, %v1203_v22, %v1244_v28 }
 0x103   : > { %v1248_v16 = vsel %vm1247_vm6, %v1212_v57, %v1246_v21 }
 0x104   : > { %v1250_v49 = vsel %vm1249_vm7, %v1221_v20, %v1248_v16 }
 0x105   : > { %v1252_v17 = vsel %vm1251_vm8, %v1230_v47, %v1250_v49 }
 0x106   : > { %1254 = vst [vmem:[%s239_s30] sm:$0xff] %v1252_v17 }
 0x107   : > { %1543 = shalt.err (!%p1540_p1)
}
 0x108   : > { %s1544_s3 = scalar_lea.hbm %s3173_s7, 128  ;;  %s1548_s28 = scalar_lea.hbm %s3217_s2, 256 }
 0x109   : > { %p1545_p2 = scmp.ne.s32.totalorder %s3173_s7, %s1544_s3  ;;  %p1549_p0 = scmp.lt.s32.totalorder %s3173_s7, %s3217_s2 }
 0x10a   : > { %p1550_p3 = scmp.lt.s32.totalorder %s1548_s28, %s1544_s3 }
 0x10b   : > { %p1546_p11 = pnand %p1545_p2, %p1691_p9 }
 0x10c   : > { %p1551_p5 = por %p1550_p3, %p1549_p0 }
 0x10d   : > { %p1547_p12 = pneg %p1546_p11 }
 0x10f   : > { %p1552_p8 = pnand %p1551_p5, %p1547_p12 }
 0x111   : > { %1555 = shalt.err (!%p1552_p8)
}
 0x112   : > { %1417 = dma.vmem_to_hbm [thread:$0]  (%p1691_p9), %s1271_s4, 128, %s3173_s7, %s1256_s16  }
 0x113 PF: > { %s1282_s15 = sand.u32 1, %s1594_s9   ;;  %p3429_p4 = scmp.ne.s32.totalorder %s3258_s24, 0 }
 0x114   : > { %p3430_p6 = scmp.ge.s32.totalorder %s1614_s14, 2  ;;  %s1283_s21 = scalar_lea.sflag [#allocation4], %s1282_s15 }
 0x116   : > { %p1420_p7 = pnand %p3430_p6, %p3429_p4 }
 0x118   : > { %p1421_p10 = pneg %p1420_p7 }
 0x11a   : > { %1589 = dma.done.wait (%p1421_p10), %s1283_s21, 128  }
 0x11b   : > { %1591 = vsyncadd (%p1421_p10), %s1283_s21, 4294967168  ;;  %s21_s14 = sadd.s32 1, %s1614_s14   ;;  %s3431_s9 = smov %s1598_s10 }
 0x11c   : > { %p18_p13 = scmp.ge.s32.totalorder %s21_s14, 4   ;;  %s3432_s10 = smov %s1602_s11 }
 0x11d   : > { %s3433_s11 = smov %s1696_s23  ;;  %s3434_s12 = smov %s1610_s13 }
 0x11e   : > { %s3435_s13 = smov %s3437_s17  ;;  %20 = sbr.rel (!%p18_p13) target bundleno = 8 (0x8), region = 86 }
 0x123   :  { %1288 = vsyncpa [#allocation3], 1 }
 0x124   :  { %1290 = vsyncpa [#allocation3 + $0x1], 1 }
 0x125   :  { %1291 = vsyncpa [#allocation6], 1 }
 0x126   :  { %1293 = vsyncpa [#allocation6 + $0x1], 1 }
 0x127   :  { %1294 = vsyncpa [#allocation4], 1 }
 0x128   :  { %1296 = vsyncpa [#allocation4 + $0x1], 1 }

</bundles_post_ra>
